<compile_context>
chip_gen: v7x
topology: tpu7x:2x2x1
jax: 0.10.0
libtpu: 0.0.40
codegen_flags: <defaults>
</compile_context>

<pallas_src>
import functools

import jax
import jax.numpy as jnp
from jax.experimental import pallas as pl
from jax.experimental.pallas import tpu as pltpu


# Scoped-VMEM cap: <= physical VMEM on v5e/v6e (128 MiB) and v7x (64 MiB).
# Default tiles below target v6e-class parts; for production shapes sweep tm (256-1024)
# and shrink the MLP's tn (e.g. 512) on v7x.
_VMEM_LIMIT_BYTES = 64 * 1024 * 1024


def _tile(dim, preferred):
    """Use `preferred` (a multiple of the (8,128) tiling) when it divides `dim`,
    otherwise fall back to the full dimension (always a legal block)."""
    return preferred if dim % preferred == 0 else dim


# ----------------------------------------------------------------------------
# Kernel 1: tiled matmul  y = x @ wt   (wt stored pre-transposed as (in, out))
# ----------------------------------------------------------------------------
def _matmul_kernel(x_ref, wt_ref, o_ref, acc_ref):
    @pl.when(pl.program_id(2) == 0)
    def _():
        acc_ref[...] = jnp.zeros_like(acc_ref)

    acc_ref[...] += jnp.dot(x_ref[...], wt_ref[...],
                            preferred_element_type=jnp.float32)

    @pl.when(pl.program_id(2) == pl.num_programs(2) - 1)
    def _():
        o_ref[...] = acc_ref[...].astype(o_ref.dtype)


def linear_pallas(x, wt, *, tm=256, tn=512, tk=512):
    """x: (M, K), wt: (K, N) -> (M, N)."""
    M, K = x.shape
    Kw, N = wt.shape
    assert K == Kw, (K, Kw)
    tm, tn, tk = _tile(M, tm), _tile(N, tn), _tile(K, tk)
    assert M % tm == 0 and N % tn == 0 and K % tk == 0

    cost = pl.CostEstimate(
        flops=2 * M * N * K,
        transcendentals=0,
        bytes_accessed=(M * K + K * N + M * N) * x.dtype.itemsize)

    return pl.pallas_call(
        _matmul_kernel,
        out_shape=jax.ShapeDtypeStruct((M, N), x.dtype),
        grid_spec=pltpu.PrefetchScalarGridSpec(
            num_scalar_prefetch=0,
            grid=(M // tm, N // tn, K // tk),          # reduction (K) axis last
            in_specs=[
                pl.BlockSpec((tm, tk), lambda i, j, k: (i, k)),
                pl.BlockSpec((tk, tn), lambda i, j, k: (k, j)),
            ],
            out_specs=pl.BlockSpec((tm, tn), lambda i, j, k: (i, j)),
            scratch_shapes=[pltpu.VMEM((tm, tn), jnp.float32)]),
        compiler_params=pltpu.CompilerParams(
            dimension_semantics=("parallel", "parallel", "arbitrary"),
            vmem_limit_bytes=_VMEM_LIMIT_BYTES),
        cost_estimate=cost,
    )(x, wt)


# ----------------------------------------------------------------------------
# Kernel 2: gated MLP  linear2(silu(linear1(x) * linear3(x)))  with 4H streamed
# ----------------------------------------------------------------------------
def _gated_mlp_kernel(x_ref, w1t_ref, w3t_ref, w2t_ref, o_ref, acc_ref):
    n = pl.program_id(1)

    @pl.when(n == 0)
    def _():
        acc_ref[...] = jnp.zeros_like(acc_ref)

    x = x_ref[...]
    h = jnp.dot(x, w1t_ref[...], preferred_element_type=jnp.float32)
    g = jnp.dot(x, w3t_ref[...], preferred_element_type=jnp.float32)
    z = h * g
    act = z * jax.nn.sigmoid(z)            # SiLU applied to the *product* (exact module order)
    acc_ref[...] += jnp.dot(act.astype(w2t_ref.dtype), w2t_ref[...],
                            preferred_element_type=jnp.float32)

    @pl.when(n == pl.num_programs(1) - 1)
    def _():
        o_ref[...] = acc_ref[...].astype(o_ref.dtype)


def gated_mlp_pallas(x, w1t, w3t, w2t, *, tm=512, tn=1024):
    """x: (M, H), w1t/w3t: (H, 4H), w2t: (4H, H)  -> (M, H).

    The SiLU gate is elementwise over the 4H dimension, so tiling 4H into tn-wide
    column chunks and accumulating act_n @ w2t[n] is exactly equivalent to the
    reference.  Weight tiles stream from HBM; only O(H*tn) weight bytes are resident.
    """
    M, H = x.shape
    H4 = w1t.shape[1]
    assert w1t.shape == (H, H4) and w3t.shape == (H, H4) and w2t.shape == (H4, H)
    tm = _tile(M, tm)      # keep >= ~512 at production shapes to stay MXU-bound
    tn = _tile(H4, tn)     # shrink (e.g. 512) on v7x's 64 MiB VMEM
    assert M % tm == 0 and H4 % tn == 0

    cost = pl.CostEstimate(
        flops=6 * M * H * H4,
        transcendentals=M * H4,
        bytes_accessed=(2 * M * H + 3 * H * H4) * x.dtype.itemsize)

    return pl.pallas_call(
        _gated_mlp_kernel,
        out_shape=jax.ShapeDtypeStruct((M, H), x.dtype),
        grid_spec=pltpu.PrefetchScalarGridSpec(
            num_scalar_prefetch=0,
            grid=(M // tm, H4 // tn),                      # 4H reduction axis last
            in_specs=[
                pl.BlockSpec((tm, H), lambda i, n: (i, 0)),   # x rows: resident across n
                pl.BlockSpec((H, tn), lambda i, n: (0, n)),   # w1^T column tile (streamed)
                pl.BlockSpec((H, tn), lambda i, n: (0, n)),   # w3^T column tile (streamed)
                pl.BlockSpec((tn, H), lambda i, n: (n, 0)),   # w2^T row tile    (streamed)
            ],
            out_specs=pl.BlockSpec((tm, H), lambda i, n: (i, 0)),
            scratch_shapes=[pltpu.VMEM((tm, H), jnp.float32)]),
        compiler_params=pltpu.CompilerParams(
            dimension_semantics=("parallel", "arbitrary"),
            vmem_limit_bytes=_VMEM_LIMIT_BYTES),
        cost_estimate=cost,
    )(x, w1t, w3t, w2t)


# ----------------------------------------------------------------------------
# Kernel 3: RMSNorm
# ----------------------------------------------------------------------------
def _rmsnorm_kernel(x_ref, w_ref, o_ref, *, eps):
    x = x_ref[...].astype(jnp.float32)
    ms = jnp.mean(x * x, axis=-1, keepdims=True)
    y = x * jax.lax.rsqrt(ms + eps) * w_ref[...].astype(jnp.float32)
    o_ref[...] = y.astype(o_ref.dtype)


def rmsnorm_pallas(x, w, eps, *, tm=512):
    """x: (M, D), w: (1, D)."""
    M, D = x.shape
    tm = _tile(M, tm)
    return pl.pallas_call(
        functools.partial(_rmsnorm_kernel, eps=eps),
        out_shape=jax.ShapeDtypeStruct((M, D), x.dtype),
        grid_spec=pltpu.PrefetchScalarGridSpec(
            num_scalar_prefetch=0,
            grid=(M // tm,),
            in_specs=[pl.BlockSpec((tm, D), lambda i: (i, 0)),
                      pl.BlockSpec((1, D), lambda i: (0, 0))],
            out_specs=pl.BlockSpec((tm, D), lambda i: (i, 0))),
        compiler_params=pltpu.CompilerParams(dimension_semantics=("parallel",)),
    )(x, w)


# ----------------------------------------------------------------------------
# Kernel 4: causal softmax attention, one (batch, head) per grid step
# ----------------------------------------------------------------------------
def _attention_kernel(q_ref, k_ref, v_ref, o_ref, *, scale, causal):
    q = q_ref[0].astype(jnp.float32)                       # (L, hd)
    k = k_ref[0].astype(jnp.float32)
    v = v_ref[0].astype(jnp.float32)
    s = jax.lax.dot_general(q, k, (((1,), (1,)), ((), ())),
                            preferred_element_type=jnp.float32) * scale   # (L, L)
    if causal:
        L = s.shape[0]
        row = jax.lax.broadcasted_iota(jnp.int32, (L, L), 0)
        col = jax.lax.broadcasted_iota(jnp.int32, (L, L), 1)
        s = jnp.where(col <= row, s, -jnp.inf)
    m = jnp.max(s, axis=-1, keepdims=True)
    p = jnp.exp(s - m)
    o = jnp.dot(p, v, preferred_element_type=jnp.float32) / jnp.sum(p, axis=-1, keepdims=True)
    o_ref[0] = o.astype(o_ref.dtype)


def attention_pallas(q, k, v, *, scale, causal):
    """q, k, v: (B*num_heads, L, head_dim)."""
    # TODO(synk): single-block softmax per head; a flash-style tiled kernel is needed for long L.
    BH, L, hd = q.shape
    kern = functools.partial(_attention_kernel, scale=scale, causal=causal)
    return pl.pallas_call(
        kern,
        out_shape=jax.ShapeDtypeStruct((BH, L, hd), q.dtype),
        grid_spec=pltpu.PrefetchScalarGridSpec(
            num_scalar_prefetch=0,
            grid=(BH,),
            in_specs=[pl.BlockSpec((1, L, hd), lambda b: (b, 0, 0))] * 3,
            out_specs=pl.BlockSpec((1, L, hd), lambda b: (b, 0, 0))),
        compiler_params=pltpu.CompilerParams(dimension_semantics=("parallel",)),
    )(q, k, v)


PALLAS_OPS = dict(linear=linear_pallas, rmsnorm=rmsnorm_pallas,
                  attention=attention_pallas, mlp=gated_mlp_pallas)


# ----------------------------------------------------------------------------
# Pure-JAX reference ops (for correctness checking of the Pallas path)
# ----------------------------------------------------------------------------
def _linear_ref(x, wt):
    return jnp.dot(x, wt)


def _rmsnorm_ref(x, w, eps):
    x32 = x.astype(jnp.float32)
    ms = jnp.mean(x32 * x32, axis=-1, keepdims=True)
    return (x32 * jax.lax.rsqrt(ms + eps) * w.astype(jnp.float32)).astype(x.dtype)


def _attention_ref(q, k, v, *, scale, causal):
    s = jnp.einsum("bqd,bkd->bqk", q.astype(jnp.float32), k.astype(jnp.float32)) * scale
    if causal:
        L = q.shape[1]
        keep = jnp.tril(jnp.ones((L, L), dtype=bool))
        s = jnp.where(keep[None], s, -jnp.inf)
    p = jax.nn.softmax(s, axis=-1)
    return jnp.einsum("bqk,bkd->bqd", p, v.astype(jnp.float32)).astype(q.dtype)


def _gated_mlp_ref(x, w1t, w3t, w2t):
    z = jnp.dot(x, w1t) * jnp.dot(x, w3t)
    act = z * jax.nn.sigmoid(z)
    return jnp.dot(act, w2t)


REF_OPS = dict(linear=_linear_ref, rmsnorm=_rmsnorm_ref,
               attention=_attention_ref, mlp=_gated_mlp_ref)


# ----------------------------------------------------------------------------
# Module-level glue (matches the PyTorch forward)
# ----------------------------------------------------------------------------
def turn_to_token(logits, key, temperature=1.0):
    """temperature==0 -> argmax; else softmax + multinomial sample (shape [..., 1])."""
    # TODO(synk): matches torch.multinomial's distribution (categorical over softmax(logits/T))
    # but not torch's RNG stream; sampling runs in plain JAX, not inside a Pallas kernel.
    if temperature == 0:
        return jnp.argmax(logits, axis=-1)[..., None]
    toks = jax.random.categorical(key, logits / temperature, axis=-1)
    return toks[..., None]


def make_pos_embedding(max_seq_len, hidden_size):
    inv_freq = 1.0 / (10000.0 ** (jnp.arange(0, hidden_size, 2, dtype=jnp.float32) / hidden_size))
    pos = jnp.arange(max_seq_len, dtype=jnp.float32)
    sincos = jnp.einsum("i,j->ij", pos, inv_freq)
    return jnp.concatenate([jnp.sin(sincos), jnp.cos(sincos)], axis=-1)   # (max_seq_len, D)


def depth_transformer_forward(params, temporal_embedding, sample_key, cfg, ops):
    linear = ops["linear"]
    rmsnorm = ops["rmsnorm"]
    attention = ops["attention"]
    gated_mlp = ops["mlp"]

    B, L, Dt = temporal_embedding.shape
    D = cfg["hidden_size"]
    nh = cfg["num_heads"]
    hd = cfg["head_dim"]
    eps = cfg["rms_norm_eps"]

    # input_projection: (B, L, Dt) -> (B, L, D)
    hidden = linear(temporal_embedding.reshape(B * L, Dt),
                    params["input_proj"]).reshape(B, L, D)

    # JOSIETransformer: positional table add, causal blocks, final norm
    x = hidden + params["pos_emb"][None, :L, :]
    causal = L > 1
    for layer in params["layers"]:
        # --- attention sub-block ---
        h2 = rmsnorm(x.reshape(B * L, D), layer["attn_norm"], eps)
        q = linear(h2, layer["wq"])
        k = linear(h2, layer["wk"])
        v = linear(h2, layer["wv"])

        def split_heads(t):
            return (t.reshape(B, L, nh, hd)
                     .transpose(0, 2, 1, 3)
                     .reshape(B * nh, L, hd))

        o = attention(split_heads(q), split_heads(k), split_heads(v),
                      scale=hd ** -0.5, causal=causal)
        o = (o.reshape(B, nh, L, hd)
               .transpose(0, 2, 1, 3)
               .reshape(B * L, nh * hd))
        x = x + linear(o, layer["wo"]).reshape(B, L, D)

        # --- gated MLP sub-block ---
        m2 = rmsnorm(x.reshape(B * L, D), layer["mlp_norm"], eps)
        x = x + gated_mlp(m2, layer["w1t"], layer["w3t"], layer["w2t"]).reshape(B, L, D)

    x = rmsnorm(x.reshape(B * L, D), params["tr_norm"], eps).reshape(B, L, D)

    # DepthTransformer.norm
    depth_hidden = rmsnorm(x.reshape(B * L, D), params["final_norm"], eps).reshape(B, L, D)
    h0 = depth_hidden[:, 0]                                           # (B, D)

    # text head
    text_logits = linear(h0, params["text_proj"])                     # (B, vocab)
    k_text, k_sem, k_ac = jax.random.split(sample_key, 3)
    text_token = turn_to_token(text_logits, k_text)[:, None, :]       # (B, 1, 1)

    # semantic head: the integer token is concatenated as a float feature (torch.cat implies it)
    semantic_input = jnp.concatenate([h0, text_token[:, 0].astype(h0.dtype)], axis=-1)
    semantic_logits = linear(semantic_input, params["sem_w"]) + params["sem_b"][None, :]
    semantic_token = turn_to_token(semantic_logits, k_sem)[:, None, :]    # (B, 1, 1)

    # acoustic heads
    ac_keys = jax.random.split(k_ac, len(params["acoustic"]))
    acoustic_logits = [linear(h0, wt) for wt in params["acoustic"]]
    acoustic_tokens = jnp.concatenate(
        [turn_to_token(lg, ak)[:, None, :] for lg, ak in zip(acoustic_logits, ac_keys)],
        axis=-1)                                                       # (B, 1, nq - 1)

    aux = {
        "depth_hidden": depth_hidden,
        "text_logits": text_logits,
        "semantic_logits": semantic_logits,
        "acoustic_logits": jnp.stack(acoustic_logits, axis=0),
    }
    return (text_token, semantic_token, acoustic_tokens), aux


# ----------------------------------------------------------------------------
# Parameter init (weights stored pre-transposed as (in, out); no per-call .T)
# ----------------------------------------------------------------------------
def init_params(key, cfg):
    D = cfg["hidden_size"]
    Dt = cfg["temporal_hidden_size"]
    H4 = 4 * D
    nh, hd = cfg["num_heads"], cfg["head_dim"]
    vocab, cb = cfg["vocab_size"], cfg["codebook_size"]
    nq = cfg["num_acoustic_quantizers"]

    keys = iter(jax.random.split(key, 64))

    def dense(fan_in, fan_out):
        w = jax.random.normal(next(keys), (fan_in, fan_out), jnp.float32)
        return w / jnp.sqrt(jnp.float32(fan_in))

    layers = []
    for _ in range(cfg["hidden_layers"]):
        layers.append({
            "attn_norm": jnp.ones((1, D), jnp.float32),
            "mlp_norm": jnp.ones((1, D), jnp.float32),
            "wq": dense(D, nh * hd),
            "wk": dense(D, nh * hd),
            "wv": dense(D, nh * hd),
            "wo": dense(nh * hd, D),
            "w1t": dense(D, H4),
            "w3t": dense(D, H4),
            "w2t": dense(H4, D),
        })

    return {
        "input_proj": dense(Dt, D),
        "pos_emb": make_pos_embedding(cfg["max_position_embeddings"], D),
        "layers": layers,
        "tr_norm": jnp.ones((1, D), jnp.float32),
        "final_norm": jnp.ones((1, D), jnp.float32),
        "text_proj": dense(D, vocab),
        "sem_w": dense(D + 1, cb),
        "sem_b": jax.random.uniform(next(keys), (cb,), jnp.float32, -0.1, 0.1),
        "acoustic": [dense(D, cb) for _ in range(nq - 1)],
    }


# ----------------------------------------------------------------------------
if __name__ == "__main__":
    cfg = dict(
        temporal_hidden_size=64,     # TemporalTransformer hidden (small test shape)
        hidden_size=32,              # depth hidden
        hidden_layers=2,
        num_heads=4,
        head_dim=8,
        max_position_embeddings=64,
        rms_norm_eps=1e-5,
        vocab_size=512,
        codebook_size=256,
        num_acoustic_quantizers=3,
    )
    B, L = 2, 8

    key = jax.random.PRNGKey(0)
    k_params, k_x, k_sample = jax.random.split(key, 3)
    params = init_params(k_params, cfg)
    temporal = jax.random.normal(k_x, (B, L, cfg["temporal_hidden_size"]), jnp.float32)

    pallas_fwd = jax.jit(functools.partial(depth_transformer_forward, cfg=cfg, ops=PALLAS_OPS))
    (text_tok, sem_tok, ac_tok), aux = pallas_fwd(params, temporal, k_sample)
    jax.block_until_ready((text_tok, sem_tok, ac_tok, aux))

    # Pure-JAX reference for correctness
    (_, _, _), ref_aux = depth_transformer_forward(params, temporal, k_sample, cfg, REF_OPS)

    assert text_tok.shape == (B, 1, 1)
    assert sem_tok.shape == (B, 1, 1)
    assert ac_tok.shape == (B, 1, cfg["num_acoustic_quantizers"] - 1)
    assert jnp.allclose(aux["depth_hidden"], ref_aux["depth_hidden"], atol=1e-4, rtol=1e-4)
    assert jnp.allclose(aux["text_logits"], ref_aux["text_logits"], atol=1e-4, rtol=1e-4)
    assert jnp.allclose(aux["semantic_logits"], ref_aux["semantic_logits"], atol=1e-4, rtol=1e-4)
    assert jnp.allclose(aux["acoustic_logits"], ref_aux["acoustic_logits"], atol=1e-4, rtol=1e-4)

    print("KERNEL_OK")
</pallas_src>

<mosaic_0001>
module attributes {stable_mosaic.version = 11 : i64} {
  func.func @_attention_kernel(%arg0: i32, %arg1: memref<1x8x8xf32, #tpu.memory_space<vmem>>, %arg2: memref<1x8x8xf32, #tpu.memory_space<vmem>>, %arg3: memref<1x8x8xf32, #tpu.memory_space<vmem>>, %arg4: memref<1x8x8xf32, #tpu.memory_space<vmem>>) attributes {dimension_semantics = [#tpu.dimension_semantics<parallel>], iteration_bounds = array<i64: 8>, scalar_prefetch = 0 : i64, scratch_operands = 0 : i64, tpu.core_type = #tpu.core_type<tc>, window_params = [{transform_indices = @transform_0, window_bounds = array<i64: 1, 8, 8>}, {transform_indices = @transform_1, window_bounds = array<i64: 1, 8, 8>}, {transform_indices = @transform_2, window_bounds = array<i64: 1, 8, 8>}, {transform_indices = @transform_3, window_bounds = array<i64: 1, 8, 8>}]} {
    %c0 = arith.constant 0 : index
    %c0_0 = arith.constant 0 : index
    %c0_1 = arith.constant 0 : index
    %0 = vector.load %arg1[%c0, %c0_0, %c0_1] : memref<1x8x8xf32, #tpu.memory_space<vmem>>, vector<1x8x8xf32>
    %1 = vector.shape_cast %0 : vector<1x8x8xf32> to vector<8x8xf32>
    %c0_2 = arith.constant 0 : index
    %c0_3 = arith.constant 0 : index
    %c0_4 = arith.constant 0 : index
    %2 = vector.load %arg2[%c0_2, %c0_3, %c0_4] : memref<1x8x8xf32, #tpu.memory_space<vmem>>, vector<1x8x8xf32>
    %3 = vector.shape_cast %2 : vector<1x8x8xf32> to vector<8x8xf32>
    %c0_5 = arith.constant 0 : index
    %c0_6 = arith.constant 0 : index
    %c0_7 = arith.constant 0 : index
    %4 = vector.load %arg3[%c0_5, %c0_6, %c0_7] : memref<1x8x8xf32, #tpu.memory_space<vmem>>, vector<1x8x8xf32>
    %5 = vector.shape_cast %4 : vector<1x8x8xf32> to vector<8x8xf32>
    %cst = arith.constant dense<0.000000e+00> : vector<8x8xf32>
    %6 = tpu.matmul %1, %3, %cst {dimension_numbers = #tpu.dot_dimension_numbers<[1], [1], [0], [0], [0, 0, 1, 0], [], []>} : vector<8x8xf32>, vector<8x8xf32>, vector<8x8xf32> -> vector<8x8xf32>
    %cst_8 = arith.constant 0.353553385 : f32
    %7 = vector.broadcast %cst_8 : f32 to vector<8x8xf32>
    %8 = arith.mulf %6, %7 : vector<8x8xf32>
    %9 = tpu.iota {dimensions = array<i32: 0>} : vector<8x8xi32>
    %10 = tpu.iota {dimensions = array<i32: 1>} : vector<8x8xi32>
    %11 = arith.cmpi sle, %10, %9 : vector<8x8xi32>
    %cst_9 = arith.constant 0xFF800000 : f32
    %12 = vector.broadcast %cst_9 : f32 to vector<8x8xf32>
    %13 = arith.select %11, %8, %12 : vector<8x8xi1>, vector<8x8xf32>
    %cst_10 = arith.constant dense<0xFF800000> : vector<8xf32>
    %14 = vector.multi_reduction <maximumf>, %13, %cst_10 [1] : vector<8x8xf32> to vector<8xf32>
    %15 = vector.shape_cast %14 : vector<8xf32> to vector<8x1xf32>
    %16 = vector.broadcast %15 : vector<8x1xf32> to vector<8x8xf32>
    %17 = arith.subf %13, %16 : vector<8x8xf32>
    %18 = math.exp %17 : vector<8x8xf32>
    %cst_11 = arith.constant dense<0.000000e+00> : vector<8x8xf32>
    %19 = tpu.matmul %18, %5, %cst_11 {dimension_numbers = #tpu.dot_dimension_numbers<[1], [0], [0], [1], [0, 0, 1, 1], [], []>} : vector<8x8xf32>, vector<8x8xf32>, vector<8x8xf32> -> vector<8x8xf32>
    %cst_12 = arith.constant dense<0.000000e+00> : vector<8xf32>
    %20 = vector.multi_reduction <add>, %18, %cst_12 [1] : vector<8x8xf32> to vector<8xf32>
    %21 = vector.shape_cast %20 : vector<8xf32> to vector<8x1xf32>
    %22 = vector.broadcast %21 : vector<8x1xf32> to vector<8x8xf32>
    %23 = arith.divf %19, %22 : vector<8x8xf32>
    %c0_13 = arith.constant 0 : index
    %c0_14 = arith.constant 0 : index
    %c0_15 = arith.constant 0 : index
    %24 = vector.load %arg4[%c0_13, %c0_14, %c0_15] : memref<1x8x8xf32, #tpu.memory_space<vmem>>, vector<1x8x8xf32>
    %25 = vector.shape_cast %24 : vector<1x8x8xf32> to vector<8x8xf32>
    %26 = vector.shape_cast %23 : vector<8x8xf32> to vector<1x8x8xf32>
    tpu.vector_store %arg4[%c0_13, %c0_14, %c0_15], %26 {strides = array<i32>} : memref<1x8x8xf32, #tpu.memory_space<vmem>>, vector<1x8x8xf32>,
    return
  }
  func.func @transform_0(%arg0: i32) -> (i32, i32, i32) {
    %c0_i32 = arith.constant 0 : i32
    %c0_i32_0 = arith.constant 0 : i32
    %c0_i32_1 = arith.constant 0 : i32
    return %arg0, %c0_i32, %c0_i32_0 : i32, i32, i32
  }
  func.func @transform_1(%arg0: i32) -> (i32, i32, i32) {
    %c0_i32 = arith.constant 0 : i32
    %c0_i32_0 = arith.constant 0 : i32
    %c0_i32_1 = arith.constant 0 : i32
    return %arg0, %c0_i32, %c0_i32_0 : i32, i32, i32
  }
  func.func @transform_2(%arg0: i32) -> (i32, i32, i32) {
    %c0_i32 = arith.constant 0 : i32
    %c0_i32_0 = arith.constant 0 : i32
    %c0_i32_1 = arith.constant 0 : i32
    return %arg0, %c0_i32, %c0_i32_0 : i32, i32, i32
  }
  func.func @transform_3(%arg0: i32) -> (i32, i32, i32) {
    %c0_i32 = arith.constant 0 : i32
    %c0_i32_0 = arith.constant 0 : i32
    %c0_i32_1 = arith.constant 0 : i32
    return %arg0, %c0_i32, %c0_i32_0 : i32, i32, i32
  }
}

module attributes {stable_mosaic.version = 11 : i64} {
  func.func @_matmul_kernel(%arg0: i32, %arg1: i32, %arg2: i32, %arg3: memref<16x64xf32, #tpu.memory_space<vmem>>, %arg4: memref<64x32xf32, #tpu.memory_space<vmem>>, %arg5: memref<16x32xf32, #tpu.memory_space<vmem>>, %arg6: memref<16x32xf32, #tpu.memory_space<vmem>>) attributes {dimension_semantics = [#tpu.dimension_semantics<parallel>, #tpu.dimension_semantics<parallel>, #tpu.dimension_semantics<arbitrary>], iteration_bounds = array<i64: 1, 1, 1>, scalar_prefetch = 0 : i64, scratch_operands = 1 : i64, tpu.core_type = #tpu.core_type<tc>, window_params = [{transform_indices = @transform_0, window_bounds = array<i64: 16, 64>}, {transform_indices = @transform_1, window_bounds = array<i64: 64, 32>}, {transform_indices = @transform_2, window_bounds = array<i64: 16, 32>}]} {
    %c0_i32 = arith.constant 0 : i32
    %0 = arith.cmpi eq, %arg2, %c0_i32 : i32
    %1 = arith.extui %0 : i1 to i32
    %c0_i32_0 = arith.constant 0 : i32
    %2 = arith.cmpi ne, %1, %c0_i32_0 : i32
    scf.if %2 {
      %cst_10 = arith.constant 0.000000e+00 : f32
      %12 = vector.broadcast %cst_10 : f32 to vector<16x32xf32>
      %c0_11 = arith.constant 0 : index
      %c0_12 = arith.constant 0 : index
      %13 = vector.load %arg6[%c0_11, %c0_12] : memref<16x32xf32, #tpu.memory_space<vmem>>, vector<16x32xf32>
      tpu.vector_store %arg6[%c0_11, %c0_12], %12 {strides = array<i32>} : memref<16x32xf32, #tpu.memory_space<vmem>>, vector<16x32xf32>,
    } else {
    }
    %c0 = arith.constant 0 : index
    %c0_1 = arith.constant 0 : index
    %3 = vector.load %arg6[%c0, %c0_1] : memref<16x32xf32, #tpu.memory_space<vmem>>, vector<16x32xf32>
    %c0_2 = arith.constant 0 : index
    %c0_3 = arith.constant 0 : index
    %4 = vector.load %arg3[%c0_2, %c0_3] : memref<16x64xf32, #tpu.memory_space<vmem>>, vector<16x64xf32>
    %c0_4 = arith.constant 0 : index
    %c0_5 = arith.constant 0 : index
    %5 = vector.load %arg4[%c0_4, %c0_5] : memref<64x32xf32, #tpu.memory_space<vmem>>, vector<64x32xf32>
    %cst = arith.constant dense<0.000000e+00> : vector<16x32xf32>
    %6 = tpu.matmul %4, %5, %cst {dimension_numbers = #tpu.dot_dimension_numbers<[1], [0], [0], [1], [0, 0, 1, 1], [], []>} : vector<16x64xf32>, vector<64x32xf32>, vector<16x32xf32> -> vector<16x32xf32>
    %7 = arith.addf %3, %6 : vector<16x32xf32>
    %c0_6 = arith.constant 0 : index
    %c0_7 = arith.constant 0 : index
    %8 = vector.load %arg6[%c0_6, %c0_7] : memref<16x32xf32, #tpu.memory_space<vmem>>, vector<16x32xf32>
    tpu.vector_store %arg6[%c0_6, %c0_7], %7 {strides = array<i32>} : memref<16x32xf32, #tpu.memory_space<vmem>>, vector<16x32xf32>,
    %c0_i32_8 = arith.constant 0 : i32
    %9 = arith.cmpi eq, %arg2, %c0_i32_8 : i32
    %10 = arith.extui %9 : i1 to i32
    %c0_i32_9 = arith.constant 0 : i32
    %11 = arith.cmpi ne, %10, %c0_i32_9 : i32
    scf.if %11 {
      %c0_10 = arith.constant 0 : index
      %c0_11 = arith.constant 0 : index
      %12 = vector.load %arg6[%c0_10, %c0_11] : memref<16x32xf32, #tpu.memory_space<vmem>>, vector<16x32xf32>
      %c0_12 = arith.constant 0 : index
      %c0_13 = arith.constant 0 : index
      %13 = vector.load %arg5[%c0_12, %c0_13] : memref<16x32xf32, #tpu.memory_space<vmem>>, vector<16x32xf32>
      tpu.vector_store %arg5[%c0_12, %c0_13], %12 {strides = array<i32>} : memref<16x32xf32, #tpu.memory_space<vmem>>, vector<16x32xf32>,
    } else {
    }
    return
  }
  func.func @transform_0(%arg0: i32, %arg1: i32, %arg2: i32) -> (i32, i32) {
    %c0_i32 = arith.constant 0 : i32
    return %arg0, %arg2 : i32, i32
  }
  func.func @transform_1(%arg0: i32, %arg1: i32, %arg2: i32) -> (i32, i32) {
    %c0_i32 = arith.constant 0 : i32
    return %arg2, %arg1 : i32, i32
  }
  func.func @transform_2(%arg0: i32, %arg1: i32, %arg2: i32) -> (i32, i32) {
    %c0_i32 = arith.constant 0 : i32
    return %arg0, %arg1 : i32, i32
  }
}

module attributes {stable_mosaic.version = 11 : i64} {
  func.func @_rmsnorm_kernel(%arg0: i32, %arg1: memref<16x32xf32, #tpu.memory_space<vmem>>, %arg2: memref<1x32xf32, #tpu.memory_space<vmem>>, %arg3: memref<16x32xf32, #tpu.memory_space<vmem>>) attributes {dimension_semantics = [#tpu.dimension_semantics<parallel>], iteration_bounds = array<i64: 1>, scalar_prefetch = 0 : i64, scratch_operands = 0 : i64, tpu.core_type = #tpu.core_type<tc>, window_params = [{transform_indices = @transform_0, window_bounds = array<i64: 16, 32>}, {pipeline_mode = #tpu.pipeline_mode<synchronous>, transform_indices = @transform_1, window_bounds = array<i64: 1, 32>}, {transform_indices = @transform_2, window_bounds = array<i64: 16, 32>}]} {
    %c0 = arith.constant 0 : index
    %c0_0 = arith.constant 0 : index
    %0 = vector.load %arg1[%c0, %c0_0] : memref<16x32xf32, #tpu.memory_space<vmem>>, vector<16x32xf32>
    %1 = arith.mulf %0, %0 : vector<16x32xf32>
    %cst = arith.constant dense<0.000000e+00> : vector<16xf32>
    %2 = vector.multi_reduction <add>, %1, %cst [1] : vector<16x32xf32> to vector<16xf32>
    %3 = vector.shape_cast %2 : vector<16xf32> to vector<16x1xf32>
    %cst_1 = arith.constant 3.200000e+01 : f32
    %4 = vector.broadcast %cst_1 : f32 to vector<16x1xf32>
    %5 = arith.divf %3, %4 : vector<16x1xf32>
    %cst_2 = arith.constant 9.99999974E-6 : f32
    %6 = vector.broadcast %cst_2 : f32 to vector<16x1xf32>
    %7 = arith.addf %5, %6 : vector<16x1xf32>
    %8 = math.rsqrt %7 : vector<16x1xf32>
    %9 = vector.broadcast %8 : vector<16x1xf32> to vector<16x32xf32>
    %10 = arith.mulf %0, %9 : vector<16x32xf32>
    %c0_3 = arith.constant 0 : index
    %c0_4 = arith.constant 0 : index
    %11 = vector.load %arg2[%c0_3, %c0_4] : memref<1x32xf32, #tpu.memory_space<vmem>>, vector<1x32xf32>
    %12 = vector.broadcast %11 : vector<1x32xf32> to vector<16x32xf32>
    %13 = arith.mulf %10, %12 : vector<16x32xf32>
    %c0_5 = arith.constant 0 : index
    %c0_6 = arith.constant 0 : index
    %14 = vector.load %arg3[%c0_5, %c0_6] : memref<16x32xf32, #tpu.memory_space<vmem>>, vector<16x32xf32>
    tpu.vector_store %arg3[%c0_5, %c0_6], %13 {strides = array<i32>} : memref<16x32xf32, #tpu.memory_space<vmem>>, vector<16x32xf32>,
    return
  }
  func.func @transform_0(%arg0: i32) -> (i32, i32) {
    %c0_i32 = arith.constant 0 : i32
    %c0_i32_0 = arith.constant 0 : i32
    return %arg0, %c0_i32 : i32, i32
  }
  func.func @transform_1(%arg0: i32) -> (i32, i32) {
    %c0_i32 = arith.constant 0 : i32
    %c0_i32_0 = arith.constant 0 : i32
    %c0_i32_1 = arith.constant 0 : i32
    return %c0_i32, %c0_i32_0 : i32, i32
  }
  func.func @transform_2(%arg0: i32) -> (i32, i32) {
    %c0_i32 = arith.constant 0 : i32
    %c0_i32_0 = arith.constant 0 : i32
    return %arg0, %c0_i32 : i32, i32
  }
}

module attributes {stable_mosaic.version = 11 : i64} {
  func.func @_matmul_kernel(%arg0: i32, %arg1: i32, %arg2: i32, %arg3: memref<16x32xf32, #tpu.memory_space<vmem>>, %arg4: memref<32x32xf32, #tpu.memory_space<vmem>>, %arg5: memref<16x32xf32, #tpu.memory_space<vmem>>, %arg6: memref<16x32xf32, #tpu.memory_space<vmem>>) attributes {dimension_semantics = [#tpu.dimension_semantics<parallel>, #tpu.dimension_semantics<parallel>, #tpu.dimension_semantics<arbitrary>], iteration_bounds = array<i64: 1, 1, 1>, scalar_prefetch = 0 : i64, scratch_operands = 1 : i64, tpu.core_type = #tpu.core_type<tc>, window_params = [{transform_indices = @transform_0, window_bounds = array<i64: 16, 32>}, {transform_indices = @transform_1, window_bounds = array<i64: 32, 32>}, {transform_indices = @transform_2, window_bounds = array<i64: 16, 32>}]} {
    %c0_i32 = arith.constant 0 : i32
    %0 = arith.cmpi eq, %arg2, %c0_i32 : i32
    %1 = arith.extui %0 : i1 to i32
    %c0_i32_0 = arith.constant 0 : i32
    %2 = arith.cmpi ne, %1, %c0_i32_0 : i32
    scf.if %2 {
      %cst_10 = arith.constant 0.000000e+00 : f32
      %12 = vector.broadcast %cst_10 : f32 to vector<16x32xf32>
      %c0_11 = arith.constant 0 : index
      %c0_12 = arith.constant 0 : index
      %13 = vector.load %arg6[%c0_11, %c0_12] : memref<16x32xf32, #tpu.memory_space<vmem>>, vector<16x32xf32>
      tpu.vector_store %arg6[%c0_11, %c0_12], %12 {strides = array<i32>} : memref<16x32xf32, #tpu.memory_space<vmem>>, vector<16x32xf32>,
    } else {
    }
    %c0 = arith.constant 0 : index
    %c0_1 = arith.constant 0 : index
    %3 = vector.load %arg6[%c0, %c0_1] : memref<16x32xf32, #tpu.memory_space<vmem>>, vector<16x32xf32>
    %c0_2 = arith.constant 0 : index
    %c0_3 = arith.constant 0 : index
    %4 = vector.load %arg3[%c0_2, %c0_3] : memref<16x32xf32, #tpu.memory_space<vmem>>, vector<16x32xf32>
    %c0_4 = arith.constant 0 : index
    %c0_5 = arith.constant 0 : index
    %5 = vector.load %arg4[%c0_4, %c0_5] : memref<32x32xf32, #tpu.memory_space<vmem>>, vector<32x32xf32>
    %cst = arith.constant dense<0.000000e+00> : vector<16x32xf32>
    %6 = tpu.matmul %4, %5, %cst {dimension_numbers = #tpu.dot_dimension_numbers<[1], [0], [0], [1], [0, 0, 1, 1], [], []>} : vector<16x32xf32>, vector<32x32xf32>, vector<16x32xf32> -> vector<16x32xf32>
    %7 = arith.addf %3, %6 : vector<16x32xf32>
    %c0_6 = arith.constant 0 : index
    %c0_7 = arith.constant 0 : index
    %8 = vector.load %arg6[%c0_6, %c0_7] : memref<16x32xf32, #tpu.memory_space<vmem>>, vector<16x32xf32>
    tpu.vector_store %arg6[%c0_6, %c0_7], %7 {strides = array<i32>} : memref<16x32xf32, #tpu.memory_space<vmem>>, vector<16x32xf32>,
    %c0_i32_8 = arith.constant 0 : i32
    %9 = arith.cmpi eq, %arg2, %c0_i32_8 : i32
    %10 = arith.extui %9 : i1 to i32
    %c0_i32_9 = arith.constant 0 : i32
    %11 = arith.cmpi ne, %10, %c0_i32_9 : i32
    scf.if %11 {
      %c0_10 = arith.constant 0 : index
      %c0_11 = arith.constant 0 : index
      %12 = vector.load %arg6[%c0_10, %c0_11] : memref<16x32xf32, #tpu.memory_space<vmem>>, vector<16x32xf32>
      %c0_12 = arith.constant 0 : index
      %c0_13 = arith.constant 0 : index
      %13 = vector.load %arg5[%c0_12, %c0_13] : memref<16x32xf32, #tpu.memory_space<vmem>>, vector<16x32xf32>
      tpu.vector_store %arg5[%c0_12, %c0_13], %12 {strides = array<i32>} : memref<16x32xf32, #tpu.memory_space<vmem>>, vector<16x32xf32>,
    } else {
    }
    return
  }
  func.func @transform_0(%arg0: i32, %arg1: i32, %arg2: i32) -> (i32, i32) {
    %c0_i32 = arith.constant 0 : i32
    return %arg0, %arg2 : i32, i32
  }
  func.func @transform_1(%arg0: i32, %arg1: i32, %arg2: i32) -> (i32, i32) {
    %c0_i32 = arith.constant 0 : i32
    return %arg2, %arg1 : i32, i32
  }
  func.func @transform_2(%arg0: i32, %arg1: i32, %arg2: i32) -> (i32, i32) {
    %c0_i32 = arith.constant 0 : i32
    return %arg0, %arg1 : i32, i32
  }
}

module attributes {stable_mosaic.version = 11 : i64} {
  func.func @_rmsnorm_kernel(%arg0: i32, %arg1: memref<16x32xf32, #tpu.memory_space<vmem>>, %arg2: memref<1x32xf32, #tpu.memory_space<vmem>>, %arg3: memref<16x32xf32, #tpu.memory_space<vmem>>) attributes {dimension_semantics = [#tpu.dimension_semantics<parallel>], iteration_bounds = array<i64: 1>, scalar_prefetch = 0 : i64, scratch_operands = 0 : i64, tpu.core_type = #tpu.core_type<tc>, window_params = [{transform_indices = @transform_0, window_bounds = array<i64: 16, 32>}, {pipeline_mode = #tpu.pipeline_mode<synchronous>, transform_indices = @transform_1, window_bounds = array<i64: 1, 32>}, {transform_indices = @transform_2, window_bounds = array<i64: 16, 32>}]} {
    %c0 = arith.constant 0 : index
    %c0_0 = arith.constant 0 : index
    %0 = vector.load %arg1[%c0, %c0_0] : memref<16x32xf32, #tpu.memory_space<vmem>>, vector<16x32xf32>
    %1 = arith.mulf %0, %0 : vector<16x32xf32>
    %cst = arith.constant dense<0.000000e+00> : vector<16xf32>
    %2 = vector.multi_reduction <add>, %1, %cst [1] : vector<16x32xf32> to vector<16xf32>
    %3 = vector.shape_cast %2 : vector<16xf32> to vector<16x1xf32>
    %cst_1 = arith.constant 3.200000e+01 : f32
    %4 = vector.broadcast %cst_1 : f32 to vector<16x1xf32>
    %5 = arith.divf %3, %4 : vector<16x1xf32>
    %cst_2 = arith.constant 9.99999974E-6 : f32
    %6 = vector.broadcast %cst_2 : f32 to vector<16x1xf32>
    %7 = arith.addf %5, %6 : vector<16x1xf32>
    %8 = math.rsqrt %7 : vector<16x1xf32>
    %9 = vector.broadcast %8 : vector<16x1xf32> to vector<16x32xf32>
    %10 = arith.mulf %0, %9 : vector<16x32xf32>
    %c0_3 = arith.constant 0 : index
    %c0_4 = arith.constant 0 : index
    %11 = vector.load %arg2[%c0_3, %c0_4] : memref<1x32xf32, #tpu.memory_space<vmem>>, vector<1x32xf32>
    %12 = vector.broadcast %11 : vector<1x32xf32> to vector<16x32xf32>
    %13 = arith.mulf %10, %12 : vector<16x32xf32>
    %c0_5 = arith.constant 0 : index
    %c0_6 = arith.constant 0 : index
    %14 = vector.load %arg3[%c0_5, %c0_6] : memref<16x32xf32, #tpu.memory_space<vmem>>, vector<16x32xf32>
    tpu.vector_store %arg3[%c0_5, %c0_6], %13 {strides = array<i32>} : memref<16x32xf32, #tpu.memory_space<vmem>>, vector<16x32xf32>,
    return
  }
  func.func @transform_0(%arg0: i32) -> (i32, i32) {
    %c0_i32 = arith.constant 0 : i32
    %c0_i32_0 = arith.constant 0 : i32
    return %arg0, %c0_i32 : i32, i32
  }
  func.func @transform_1(%arg0: i32) -> (i32, i32) {
    %c0_i32 = arith.constant 0 : i32
    %c0_i32_0 = arith.constant 0 : i32
    %c0_i32_1 = arith.constant 0 : i32
    return %c0_i32, %c0_i32_0 : i32, i32
  }
  func.func @transform_2(%arg0: i32) -> (i32, i32) {
    %c0_i32 = arith.constant 0 : i32
    %c0_i32_0 = arith.constant 0 : i32
    return %arg0, %c0_i32 : i32, i32
  }
}

module attributes {stable_mosaic.version = 11 : i64} {
  func.func @_gated_mlp_kernel(%arg0: i32, %arg1: i32, %arg2: memref<16x32xf32, #tpu.memory_space<vmem>>, %arg3: memref<32x128xf32, #tpu.memory_space<vmem>>, %arg4: memref<32x128xf32, #tpu.memory_space<vmem>>, %arg5: memref<128x32xf32, #tpu.memory_space<vmem>>, %arg6: memref<16x32xf32, #tpu.memory_space<vmem>>, %arg7: memref<16x32xf32, #tpu.memory_space<vmem>>) attributes {dimension_semantics = [#tpu.dimension_semantics<parallel>, #tpu.dimension_semantics<arbitrary>], iteration_bounds = array<i64: 1, 1>, scalar_prefetch = 0 : i64, scratch_operands = 1 : i64, tpu.core_type = #tpu.core_type<tc>, window_params = [{transform_indices = @transform_0, window_bounds = array<i64: 16, 32>}, {transform_indices = @transform_1, window_bounds = array<i64: 32, 128>}, {transform_indices = @transform_2, window_bounds = array<i64: 32, 128>}, {transform_indices = @transform_3, window_bounds = array<i64: 128, 32>}, {transform_indices = @transform_4, window_bounds = array<i64: 16, 32>}]} {
    %c0_i32 = arith.constant 0 : i32
    %0 = arith.cmpi eq, %arg1, %c0_i32 : i32
    %1 = arith.extui %0 : i1 to i32
    %c0_i32_0 = arith.constant 0 : i32
    %2 = arith.cmpi ne, %1, %c0_i32_0 : i32
    scf.if %2 {
      %cst_17 = arith.constant 0.000000e+00 : f32
      %23 = vector.broadcast %cst_17 : f32 to vector<16x32xf32>
      %c0_18 = arith.constant 0 : index
      %c0_19 = arith.constant 0 : index
      %24 = vector.load %arg7[%c0_18, %c0_19] : memref<16x32xf32, #tpu.memory_space<vmem>>, vector<16x32xf32>
      tpu.vector_store %arg7[%c0_18, %c0_19], %23 {strides = array<i32>} : memref<16x32xf32, #tpu.memory_space<vmem>>, vector<16x32xf32>,
    } else {
    }
    %c0 = arith.constant 0 : index
    %c0_1 = arith.constant 0 : index
    %3 = vector.load %arg2[%c0, %c0_1] : memref<16x32xf32, #tpu.memory_space<vmem>>, vector<16x32xf32>
    %c0_2 = arith.constant 0 : index
    %c0_3 = arith.constant 0 : index
    %4 = vector.load %arg3[%c0_2, %c0_3] : memref<32x128xf32, #tpu.memory_space<vmem>>, vector<32x128xf32>
    %cst = arith.constant dense<0.000000e+00> : vector<16x128xf32>
    %5 = tpu.matmul %3, %4, %cst {dimension_numbers = #tpu.dot_dimension_numbers<[1], [0], [0], [1], [0, 0, 1, 1], [], []>} : vector<16x32xf32>, vector<32x128xf32>, vector<16x128xf32> -> vector<16x128xf32>
    %c0_4 = arith.constant 0 : index
    %c0_5 = arith.constant 0 : index
    %6 = vector.load %arg4[%c0_4, %c0_5] : memref<32x128xf32, #tpu.memory_space<vmem>>, vector<32x128xf32>
    %cst_6 = arith.constant dense<0.000000e+00> : vector<16x128xf32>
    %7 = tpu.matmul %3, %6, %cst_6 {dimension_numbers = #tpu.dot_dimension_numbers<[1], [0], [0], [1], [0, 0, 1, 1], [], []>} : vector<16x32xf32>, vector<32x128xf32>, vector<16x128xf32> -> vector<16x128xf32>
    %8 = arith.mulf %5, %7 : vector<16x128xf32>
    %9 = arith.negf %8 : vector<16x128xf32>
    %10 = math.exp %9 : vector<16x128xf32>
    %cst_7 = arith.constant 1.000000e+00 : f32
    %11 = vector.broadcast %cst_7 : f32 to vector<16x128xf32>
    %12 = arith.addf %11, %10 : vector<16x128xf32>
    %13 = arith.divf %11, %12 : vector<16x128xf32>
    %14 = arith.mulf %8, %13 : vector<16x128xf32>
    %c0_8 = arith.constant 0 : index
    %c0_9 = arith.constant 0 : index
    %15 = vector.load %arg7[%c0_8, %c0_9] : memref<16x32xf32, #tpu.memory_space<vmem>>, vector<16x32xf32>
    %c0_10 = arith.constant 0 : index
    %c0_11 = arith.constant 0 : index
    %16 = vector.load %arg5[%c0_10, %c0_11] : memref<128x32xf32, #tpu.memory_space<vmem>>, vector<128x32xf32>
    %cst_12 = arith.constant dense<0.000000e+00> : vector<16x32xf32>
    %17 = tpu.matmul %14, %16, %cst_12 {dimension_numbers = #tpu.dot_dimension_numbers<[1], [0], [0], [1], [0, 0, 1, 1], [], []>} : vector<16x128xf32>, vector<128x32xf32>, vector<16x32xf32> -> vector<16x32xf32>
    %18 = arith.addf %15, %17 : vector<16x32xf32>
    %c0_13 = arith.constant 0 : index
    %c0_14 = arith.constant 0 : index
    %19 = vector.load %arg7[%c0_13, %c0_14] : memref<16x32xf32, #tpu.memory_space<vmem>>, vector<16x32xf32>
    tpu.vector_store %arg7[%c0_13, %c0_14], %18 {strides = array<i32>} : memref<16x32xf32, #tpu.memory_space<vmem>>, vector<16x32xf32>,
    %c0_i32_15 = arith.constant 0 : i32
    %20 = arith.cmpi eq, %arg1, %c0_i32_15 : i32
    %21 = arith.extui %20 : i1 to i32
    %c0_i32_16 = arith.constant 0 : i32
    %22 = arith.cmpi ne, %21, %c0_i32_16 : i32
    scf.if %22 {
      %c0_17 = arith.constant 0 : index
      %c0_18 = arith.constant 0 : index
      %23 = vector.load %arg7[%c0_17, %c0_18] : memref<16x32xf32, #tpu.memory_space<vmem>>, vector<16x32xf32>
      %c0_19 = arith.constant 0 : index
      %c0_20 = arith.constant 0 : index
      %24 = vector.load %arg6[%c0_19, %c0_20] : memref<16x32xf32, #tpu.memory_space<vmem>>, vector<16x32xf32>
      tpu.vector_store %arg6[%c0_19, %c0_20], %23 {strides = array<i32>} : memref<16x32xf32, #tpu.memory_space<vmem>>, vector<16x32xf32>,
    } else {
    }
    return
  }
  func.func @transform_0(%arg0: i32, %arg1: i32) -> (i32, i32) {
    %c0_i32 = arith.constant 0 : i32
    %c0_i32_0 = arith.constant 0 : i32
    return %arg0, %c0_i32 : i32, i32
  }
  func.func @transform_1(%arg0: i32, %arg1: i32) -> (i32, i32) {
    %c0_i32 = arith.constant 0 : i32
    %c0_i32_0 = arith.constant 0 : i32
    return %c0_i32, %arg1 : i32, i32
  }
  func.func @transform_2(%arg0: i32, %arg1: i32) -> (i32, i32) {
    %c0_i32 = arith.constant 0 : i32
    %c0_i32_0 = arith.constant 0 : i32
    return %c0_i32, %arg1 : i32, i32
  }
  func.func @transform_3(%arg0: i32, %arg1: i32) -> (i32, i32) {
    %c0_i32 = arith.constant 0 : i32
    %c0_i32_0 = arith.constant 0 : i32
    return %arg1, %c0_i32 : i32, i32
  }
  func.func @transform_4(%arg0: i32, %arg1: i32) -> (i32, i32) {
    %c0_i32 = arith.constant 0 : i32
    %c0_i32_0 = arith.constant 0 : i32
    return %arg0, %c0_i32 : i32, i32
  }
}

module attributes {stable_mosaic.version = 11 : i64} {
  func.func @_matmul_kernel(%arg0: i32, %arg1: i32, %arg2: i32, %arg3: memref<2x32xf32, #tpu.memory_space<vmem>>, %arg4: memref<32x256xf32, #tpu.memory_space<vmem>>, %arg5: memref<2x256xf32, #tpu.memory_space<vmem>>, %arg6: memref<2x256xf32, #tpu.memory_space<vmem>>) attributes {dimension_semantics = [#tpu.dimension_semantics<parallel>, #tpu.dimension_semantics<parallel>, #tpu.dimension_semantics<arbitrary>], iteration_bounds = array<i64: 1, 1, 1>, scalar_prefetch = 0 : i64, scratch_operands = 1 : i64, tpu.core_type = #tpu.core_type<tc>, window_params = [{transform_indices = @transform_0, window_bounds = array<i64: 2, 32>}, {transform_indices = @transform_1, window_bounds = array<i64: 32, 256>}, {transform_indices = @transform_2, window_bounds = array<i64: 2, 256>}]} {
    %c0_i32 = arith.constant 0 : i32
    %0 = arith.cmpi eq, %arg2, %c0_i32 : i32
    %1 = arith.extui %0 : i1 to i32
    %c0_i32_0 = arith.constant 0 : i32
    %2 = arith.cmpi ne, %1, %c0_i32_0 : i32
    scf.if %2 {
      %cst_10 = arith.constant 0.000000e+00 : f32
      %12 = vector.broadcast %cst_10 : f32 to vector<2x256xf32>
      %c0_11 = arith.constant 0 : index
      %c0_12 = arith.constant 0 : index
      %13 = vector.load %arg6[%c0_11, %c0_12] : memref<2x256xf32, #tpu.memory_space<vmem>>, vector<2x256xf32>
      tpu.vector_store %arg6[%c0_11, %c0_12], %12 {strides = array<i32>} : memref<2x256xf32, #tpu.memory_space<vmem>>, vector<2x256xf32>,
    } else {
    }
    %c0 = arith.constant 0 : index
    %c0_1 = arith.constant 0 : index
    %3 = vector.load %arg6[%c0, %c0_1] : memref<2x256xf32, #tpu.memory_space<vmem>>, vector<2x256xf32>
    %c0_2 = arith.constant 0 : index
    %c0_3 = arith.constant 0 : index
    %4 = vector.load %arg3[%c0_2, %c0_3] : memref<2x32xf32, #tpu.memory_space<vmem>>, vector<2x32xf32>
    %c0_4 = arith.constant 0 : index
    %c0_5 = arith.constant 0 : index
    %5 = vector.load %arg4[%c0_4, %c0_5] : memref<32x256xf32, #tpu.memory_space<vmem>>, vector<32x256xf32>
    %cst = arith.constant dense<0.000000e+00> : vector<2x256xf32>
    %6 = tpu.matmul %4, %5, %cst {dimension_numbers = #tpu.dot_dimension_numbers<[1], [0], [0], [1], [0, 0, 1, 1], [], []>} : vector<2x32xf32>, vector<32x256xf32>, vector<2x256xf32> -> vector<2x256xf32>
    %7 = arith.addf %3, %6 : vector<2x256xf32>
    %c0_6 = arith.constant 0 : index
    %c0_7 = arith.constant 0 : index
    %8 = vector.load %arg6[%c0_6, %c0_7] : memref<2x256xf32, #tpu.memory_space<vmem>>, vector<2x256xf32>
    tpu.vector_store %arg6[%c0_6, %c0_7], %7 {strides = array<i32>} : memref<2x256xf32, #tpu.memory_space<vmem>>, vector<2x256xf32>,
    %c0_i32_8 = arith.constant 0 : i32
    %9 = arith.cmpi eq, %arg2, %c0_i32_8 : i32
    %10 = arith.extui %9 : i1 to i32
    %c0_i32_9 = arith.constant 0 : i32
    %11 = arith.cmpi ne, %10, %c0_i32_9 : i32
    scf.if %11 {
      %c0_10 = arith.constant 0 : index
      %c0_11 = arith.constant 0 : index
      %12 = vector.load %arg6[%c0_10, %c0_11] : memref<2x256xf32, #tpu.memory_space<vmem>>, vector<2x256xf32>
      %c0_12 = arith.constant 0 : index
      %c0_13 = arith.constant 0 : index
      %13 = vector.load %arg5[%c0_12, %c0_13] : memref<2x256xf32, #tpu.memory_space<vmem>>, vector<2x256xf32>
      tpu.vector_store %arg5[%c0_12, %c0_13], %12 {strides = array<i32>} : memref<2x256xf32, #tpu.memory_space<vmem>>, vector<2x256xf32>,
    } else {
    }
    return
  }
  func.func @transform_0(%arg0: i32, %arg1: i32, %arg2: i32) -> (i32, i32) {
    %c0_i32 = arith.constant 0 : i32
    return %arg0, %arg2 : i32, i32
  }
  func.func @transform_1(%arg0: i32, %arg1: i32, %arg2: i32) -> (i32, i32) {
    %c0_i32 = arith.constant 0 : i32
    return %arg2, %arg1 : i32, i32
  }
  func.func @transform_2(%arg0: i32, %arg1: i32, %arg2: i32) -> (i32, i32) {
    %c0_i32 = arith.constant 0 : i32
    return %arg0, %arg1 : i32, i32
  }
}

module attributes {stable_mosaic.version = 11 : i64} {
  func.func @_matmul_kernel(%arg0: i32, %arg1: i32, %arg2: i32, %arg3: memref<2x32xf32, #tpu.memory_space<vmem>>, %arg4: memref<32x512xf32, #tpu.memory_space<vmem>>, %arg5: memref<2x512xf32, #tpu.memory_space<vmem>>, %arg6: memref<2x512xf32, #tpu.memory_space<vmem>>) attributes {dimension_semantics = [#tpu.dimension_semantics<parallel>, #tpu.dimension_semantics<parallel>, #tpu.dimension_semantics<arbitrary>], iteration_bounds = array<i64: 1, 1, 1>, scalar_prefetch = 0 : i64, scratch_operands = 1 : i64, tpu.core_type = #tpu.core_type<tc>, window_params = [{transform_indices = @transform_0, window_bounds = array<i64: 2, 32>}, {transform_indices = @transform_1, window_bounds = array<i64: 32, 512>}, {transform_indices = @transform_2, window_bounds = array<i64: 2, 512>}]} {
    %c0_i32 = arith.constant 0 : i32
    %0 = arith.cmpi eq, %arg2, %c0_i32 : i32
    %1 = arith.extui %0 : i1 to i32
    %c0_i32_0 = arith.constant 0 : i32
    %2 = arith.cmpi ne, %1, %c0_i32_0 : i32
    scf.if %2 {
      %cst_10 = arith.constant 0.000000e+00 : f32
      %12 = vector.broadcast %cst_10 : f32 to vector<2x512xf32>
      %c0_11 = arith.constant 0 : index
      %c0_12 = arith.constant 0 : index
      %13 = vector.load %arg6[%c0_11, %c0_12] : memref<2x512xf32, #tpu.memory_space<vmem>>, vector<2x512xf32>
      tpu.vector_store %arg6[%c0_11, %c0_12], %12 {strides = array<i32>} : memref<2x512xf32, #tpu.memory_space<vmem>>, vector<2x512xf32>,
    } else {
    }
    %c0 = arith.constant 0 : index
    %c0_1 = arith.constant 0 : index
    %3 = vector.load %arg6[%c0, %c0_1] : memref<2x512xf32, #tpu.memory_space<vmem>>, vector<2x512xf32>
    %c0_2 = arith.constant 0 : index
    %c0_3 = arith.constant 0 : index
    %4 = vector.load %arg3[%c0_2, %c0_3] : memref<2x32xf32, #tpu.memory_space<vmem>>, vector<2x32xf32>
    %c0_4 = arith.constant 0 : index
    %c0_5 = arith.constant 0 : index
    %5 = vector.load %arg4[%c0_4, %c0_5] : memref<32x512xf32, #tpu.memory_space<vmem>>, vector<32x512xf32>
    %cst = arith.constant dense<0.000000e+00> : vector<2x512xf32>
    %6 = tpu.matmul %4, %5, %cst {dimension_numbers = #tpu.dot_dimension_numbers<[1], [0], [0], [1], [0, 0, 1, 1], [], []>} : vector<2x32xf32>, vector<32x512xf32>, vector<2x512xf32> -> vector<2x512xf32>
    %7 = arith.addf %3, %6 : vector<2x512xf32>
    %c0_6 = arith.constant 0 : index
    %c0_7 = arith.constant 0 : index
    %8 = vector.load %arg6[%c0_6, %c0_7] : memref<2x512xf32, #tpu.memory_space<vmem>>, vector<2x512xf32>
    tpu.vector_store %arg6[%c0_6, %c0_7], %7 {strides = array<i32>} : memref<2x512xf32, #tpu.memory_space<vmem>>, vector<2x512xf32>,
    %c0_i32_8 = arith.constant 0 : i32
    %9 = arith.cmpi eq, %arg2, %c0_i32_8 : i32
    %10 = arith.extui %9 : i1 to i32
    %c0_i32_9 = arith.constant 0 : i32
    %11 = arith.cmpi ne, %10, %c0_i32_9 : i32
    scf.if %11 {
      %c0_10 = arith.constant 0 : index
      %c0_11 = arith.constant 0 : index
      %12 = vector.load %arg6[%c0_10, %c0_11] : memref<2x512xf32, #tpu.memory_space<vmem>>, vector<2x512xf32>
      %c0_12 = arith.constant 0 : index
      %c0_13 = arith.constant 0 : index
      %13 = vector.load %arg5[%c0_12, %c0_13] : memref<2x512xf32, #tpu.memory_space<vmem>>, vector<2x512xf32>
      tpu.vector_store %arg5[%c0_12, %c0_13], %12 {strides = array<i32>} : memref<2x512xf32, #tpu.memory_space<vmem>>, vector<2x512xf32>,
    } else {
    }
    return
  }
  func.func @transform_0(%arg0: i32, %arg1: i32, %arg2: i32) -> (i32, i32) {
    %c0_i32 = arith.constant 0 : i32
    return %arg0, %arg2 : i32, i32
  }
  func.func @transform_1(%arg0: i32, %arg1: i32, %arg2: i32) -> (i32, i32) {
    %c0_i32 = arith.constant 0 : i32
    return %arg2, %arg1 : i32, i32
  }
  func.func @transform_2(%arg0: i32, %arg1: i32, %arg2: i32) -> (i32, i32) {
    %c0_i32 = arith.constant 0 : i32
    return %arg0, %arg1 : i32, i32
  }
}

module attributes {stable_mosaic.version = 11 : i64} {
  func.func @_matmul_kernel(%arg0: i32, %arg1: i32, %arg2: i32, %arg3: memref<2x33xf32, #tpu.memory_space<vmem>>, %arg4: memref<33x256xf32, #tpu.memory_space<vmem>>, %arg5: memref<2x256xf32, #tpu.memory_space<vmem>>, %arg6: memref<2x256xf32, #tpu.memory_space<vmem>>) attributes {dimension_semantics = [#tpu.dimension_semantics<parallel>, #tpu.dimension_semantics<parallel>, #tpu.dimension_semantics<arbitrary>], iteration_bounds = array<i64: 1, 1, 1>, scalar_prefetch = 0 : i64, scratch_operands = 1 : i64, tpu.core_type = #tpu.core_type<tc>, window_params = [{transform_indices = @transform_0, window_bounds = array<i64: 2, 33>}, {transform_indices = @transform_1, window_bounds = array<i64: 33, 256>}, {transform_indices = @transform_2, window_bounds = array<i64: 2, 256>}]} {
    %c0_i32 = arith.constant 0 : i32
    %0 = arith.cmpi eq, %arg2, %c0_i32 : i32
    %1 = arith.extui %0 : i1 to i32
    %c0_i32_0 = arith.constant 0 : i32
    %2 = arith.cmpi ne, %1, %c0_i32_0 : i32
    scf.if %2 {
      %cst_10 = arith.constant 0.000000e+00 : f32
      %12 = vector.broadcast %cst_10 : f32 to vector<2x256xf32>
      %c0_11 = arith.constant 0 : index
      %c0_12 = arith.constant 0 : index
      %13 = vector.load %arg6[%c0_11, %c0_12] : memref<2x256xf32, #tpu.memory_space<vmem>>, vector<2x256xf32>
      tpu.vector_store %arg6[%c0_11, %c0_12], %12 {strides = array<i32>} : memref<2x256xf32, #tpu.memory_space<vmem>>, vector<2x256xf32>,
    } else {
    }
    %c0 = arith.constant 0 : index
    %c0_1 = arith.constant 0 : index
    %3 = vector.load %arg6[%c0, %c0_1] : memref<2x256xf32, #tpu.memory_space<vmem>>, vector<2x256xf32>
    %c0_2 = arith.constant 0 : index
    %c0_3 = arith.constant 0 : index
    %4 = vector.load %arg3[%c0_2, %c0_3] : memref<2x33xf32, #tpu.memory_space<vmem>>, vector<2x33xf32>
    %c0_4 = arith.constant 0 : index
    %c0_5 = arith.constant 0 : index
    %5 = vector.load %arg4[%c0_4, %c0_5] : memref<33x256xf32, #tpu.memory_space<vmem>>, vector<33x256xf32>
    %cst = arith.constant dense<0.000000e+00> : vector<2x256xf32>
    %6 = tpu.matmul %4, %5, %cst {dimension_numbers = #tpu.dot_dimension_numbers<[1], [0], [0], [1], [0, 0, 1, 1], [], []>} : vector<2x33xf32>, vector<33x256xf32>, vector<2x256xf32> -> vector<2x256xf32>
    %7 = arith.addf %3, %6 : vector<2x256xf32>
    %c0_6 = arith.constant 0 : index
    %c0_7 = arith.constant 0 : index
    %8 = vector.load %arg6[%c0_6, %c0_7] : memref<2x256xf32, #tpu.memory_space<vmem>>, vector<2x256xf32>
    tpu.vector_store %arg6[%c0_6, %c0_7], %7 {strides = array<i32>} : memref<2x256xf32, #tpu.memory_space<vmem>>, vector<2x256xf32>,
    %c0_i32_8 = arith.constant 0 : i32
    %9 = arith.cmpi eq, %arg2, %c0_i32_8 : i32
    %10 = arith.extui %9 : i1 to i32
    %c0_i32_9 = arith.constant 0 : i32
    %11 = arith.cmpi ne, %10, %c0_i32_9 : i32
    scf.if %11 {
      %c0_10 = arith.constant 0 : index
      %c0_11 = arith.constant 0 : index
      %12 = vector.load %arg6[%c0_10, %c0_11] : memref<2x256xf32, #tpu.memory_space<vmem>>, vector<2x256xf32>
      %c0_12 = arith.constant 0 : index
      %c0_13 = arith.constant 0 : index
      %13 = vector.load %arg5[%c0_12, %c0_13] : memref<2x256xf32, #tpu.memory_space<vmem>>, vector<2x256xf32>
      tpu.vector_store %arg5[%c0_12, %c0_13], %12 {strides = array<i32>} : memref<2x256xf32, #tpu.memory_space<vmem>>, vector<2x256xf32>,
    } else {
    }
    return
  }
  func.func @transform_0(%arg0: i32, %arg1: i32, %arg2: i32) -> (i32, i32) {
    %c0_i32 = arith.constant 0 : i32
    return %arg0, %arg2 : i32, i32
  }
  func.func @transform_1(%arg0: i32, %arg1: i32, %arg2: i32) -> (i32, i32) {
    %c0_i32 = arith.constant 0 : i32
    return %arg2, %arg1 : i32, i32
  }
  func.func @transform_2(%arg0: i32, %arg1: i32, %arg2: i32) -> (i32, i32) {
    %c0_i32 = arith.constant 0 : i32
    return %arg0, %arg1 : i32, i32
  }
}

</mosaic_0001>

<bundles_post_ra>
// kernel: depth_transformer_forward.28
= control target key start
LH: loop header
LB: loop body
LE: loop exit
PB: predicated region body
PF: predicated region fallthrough
CT: control target
= control target key end

     0   :  { %vm16_vm0 = vcmask 261120   ;;  %s134_s0 = inlined_call_operand.vmem [shape: f32[16,32], index: 0, kind: input, shape index: {}]   ;;  %s135_s1 = inlined_call_operand.vmem [shape: f32[1,32], index: 1, kind: input, shape index: {}]   ;;  %s136_s2 = inlined_call_operand.hbm [shape: f32[16,32], index: 2, kind: output, shape index: {}]  }
   0x1   :  { %v12_v0 = vld [vmem:[%s134_s0] sm:$0xff]  ;;  %v13_v1 = vld [vmem:[%s134_s0 + $0x8] sm:$0xff] }
   0x2   :  { %7 = vsyncpa [#allocation3], 0  ;;  %v14_v2 = vmul.f32 %v12_v0, %v12_v0  ;;  %v15_v3 = vmul.f32 %v13_v1, %v13_v1  ;;  %v59_v13 = vld [vmem:[%s135_s1] ss:$0 sm:$0xff]  ;;  %s91_s14 = smov [#allocation2]  }
   0x3   :  { %s48_s15 = sshll.u32 %s91_s14, 4  ;;  %s49_s15 = int_to_ptr.vmem [resolvable:$true] %s48_s15 }
   0x4   :  { %v17_v4 = vsel %vm16_vm0, %v14_v2, 0.0  ;;  %v20_v5 = vsel %vm16_vm0, %v15_v3, 0.0  ;;  %s67_s16 = scalar_lea.vmem %s49_s15, 256  ;;  %p72_p1 = scmp.lt.s32.totalorder %s49_s15, %s49_s15 }
   0x5   :  { %18 = vadd.xlane.f32.xlu0 %v17_v4  ;;  %p68_p0 = scmp.ne.s32.totalorder %s49_s15, %s67_s16  ;;  %p73_p2 = scmp.lt.s32.totalorder %s67_s16, %s67_s16 }
   0x7   :  { %p74_p3 = por %p73_p2, %p72_p1 }
   0x9   :  { %21 = vadd.xlane.f32.xlu0 %v20_v5  ;;  %p75_p4 = pnand %p74_p3, %p68_p0 }
  0x92   :  { %v19_v6 = vpop.xlane.xlu0 %18 }
  0x93   :  { %v24_v7 = vmul.f32 0.03125, %v19_v6 }
  0x95   :  { %v26_v8 = vadd.f32 1e-05, %v24_v7 }
  0x96   :  { %v22_v9 = vpop.xlane.xlu0 %21 }
  0x97   :  { %63 = vrsqrt.f32 %v26_v8  ;;  %v25_v10 = vmul.f32 0.03125, %v22_v9 }
  0x99   :  { %v27_v11 = vadd.f32 1e-05, %v25_v10 }
  0x9b   :  { %65 = vrsqrt.f32 %v27_v11 }
  0xa1   :  { %v64_v12 = vpop.eup %63 }
  0xa2   :  { %v30_v14 = vmul.f32 %v64_v12, %v12_v0 }
  0xa4   :  { %v39_v15 = vmul.f32 %v59_v13, %v30_v14 }
  0xa5   :  { %v66_v16 = vpop.eup %65 }
  0xa6   :  { %v31_v17 = vmul.f32 %v66_v16, %v13_v1  ;;  %41 = vst.msk [vmem:[#allocation2] sm:$0xff] %vm16_vm0, %v39_v15 }
  0xa8   :  { %v40_v18 = vmul.f32 %v59_v13, %v31_v17 }
  0xaa   :  { %42 = vst.msk [vmem:[#allocation2 + $0x8] sm:$0xff] %vm16_vm0, %v40_v18 }
  0xab   :  { %78 = shalt.err (!%p75_p4)
}
  0xac   :  { %s79_s18 = scalar_lea.hbm %s136_s2, 256 }
  0xad   :  { %p80_p5 = scmp.ne.s32.totalorder %s136_s2, %s79_s18  ;;  %p83_p6 = scmp.lt.u32.totalorder %s79_s18, %s136_s2 }
  0xaf   :  { %p85_p7 = pnand %p83_p6, %p80_p5 }
  0xb1   :  { %88 = shalt.err (!%p85_p7)
}
  0xb2   :  { %s92_s23 = smov 128   ;;  %s93_s24 = smov 8  }
  0xb3   :  { %54 = dma.vmem_to_hbm [thread:$0]  %s49_s15, 256, %s136_s2, [#allocation3], %s92_s23, %s92_s23, %s93_s24  }
  0xb4   :  { %89 = dma.done.wait [#allocation3], 256  }
  0xb5   :  { %90 = vsyncadd [#allocation3], 4294967040 }
  0xb6   :  { %58 = vsyncpa [#allocation3], 1 }

// kernel: depth_transformer_forward.32
= control target key start
LH: loop header
LB: loop body
LE: loop exit
PB: predicated region body
PF: predicated region fallthrough
CT: control target
= control target key end

     0   :  { %s521_s12 = smov 0   ;;  %s556_s0 = inlined_call_operand.vmem [shape: f32[8,8,8], index: 0, kind: input, shape index: {}]   ;;  %s557_s1 = inlined_call_operand.vmem [shape: f32[8,8,8], index: 1, kind: input, shape index: {}]   ;;  %s558_s2 = inlined_call_operand.vmem [shape: f32[8,8,8], index: 2, kind: input, shape index: {}]   ;;  %s559_s3 = inlined_call_operand.vmem [shape: f32[8,8,8], index: 3, kind: output, shape index: {}]  }
   0x1 LB: > { %s449_s13 = sadd.s32 4294967295, %s497_s12   ;;  %p453_p0 = scmp.ge.s32.totalorder %s497_s12, 1  ;;  %s497_s12 = sphi %s521_s12, %s13_s12  }
   0x2   : > { %p154_p1 = scmp.lt.s32.totalorder %s497_s12, 9 }
   0x4   : > { %p155_p2 = pnand %p453_p0, %p154_p1 }
   0x5   : > { %p184_p3 = scmp.lt.s32.totalorder (!%p155_p2), %s449_s13, 7  ;;  %v499_v0 = vmov (!%p155_p2), 0.0   ;;  %vm500_vm0 = vmmov (!%p155_p2), 0   ;;  %vm203_vm1 = vcmask (!%p155_p2), 64512   ;;  %v281_v3 = vlaneseq (!%p155_p2) }
   0x6   : > { %158 = sbr.rel (%p155_p2) target bundleno = 608 (0x260), region = 32  ;;  %467 = vmatprep.subr.mxu0 (!%p155_p2), %v499_v0  ;;  %469 = vmatprep.mubr.msk.f32.mxu0 (!%p155_p2), %vm500_vm0, %v499_v0 }
   0x7   : > { %472 = vmatprep.subr.mxu1 (!%p155_p2), %v499_v0  ;;  %474 = vmatprep.mubr.msk.f32.mxu1 (!%p155_p2), %vm500_vm0, %v499_v0  ;;  %v282_v4 = vshrl.u32 (!%p155_p2), %v281_v3, 7  ;;  %v284_v5 = vand.u32 (!%p155_p2), 127, %v281_v3 }
   0x9   : > { %vm285_vm2 = vcmp.le.s32.totalorder (!%p155_p2), %v284_v5, %v282_v4 }
   0xd   : > { %s561_s13 = smov (!%p184_p3, %s449_s13), 7 }
   0xe   : > { %s529_s14 = sshll.u32 %s561_s13, 3 }
   0xf   : > { %s191_s17 = scalar_lea.vmem %s557_s1, %s529_s14  ;;  %s187_s20 = scalar_lea.vmem %s556_s0, %s529_s14 }
  0x10   : > { %v201_v1 = vld [vmem:[%s191_s17] sm:$0xff]  ;;  %s195_s23 = scalar_lea.vmem %s558_s2, %s529_s14  ;;  %s199_s26 = scalar_lea.vmem %s559_s3, %s529_s14 }
  0x11   : > { %468 = vmatpush3.xpose.msk.msra.mxu0 %vm203_vm1, %v201_v1  ;;  %v200_v2 = vld [vmem:[%s187_s20] sm:$0xff] }
  0x12   : > { %v202_v11 = vld [vmem:[%s195_s23] sm:$0xff] }
  0x13   : > { %473 = vmatpush3.msra.mxu1 %v202_v11 }
  0x14   : > { %470 = vmatmul.mubr.msk.f32.vlgmr.msra.gmra.mrb[0].mxu0 %vm203_vm1, %v200_v2 }
  0xe7   : > { %v276_v6 = vpop.f32.mrb[0].mxu0 }
  0xe8   : > { %v280_v7 = vmul.f32 0.35355338, %v276_v6  ;;  %v471_v8 = vpop.f32.mrb[1].mxu0 }
  0xea   : > { %v286_v9 = vsel %vm285_vm2, %v280_v7, -inf }
  0xeb   : > { %v287_v10 = vsel %vm203_vm1, %v286_v9, -inf }
  0xec   : > { %288 = vmax.xlane.f32.xlu0 %v287_v10 }
 0x179   : > { %v289_v12 = vpop.xlane.xlu0 %288 }
 0x17a   : > { %v290_v13 = vsub.f32 %v286_v9, %v289_v12 }
 0x17c   : > { %v291_v14 = vmul.f32 1.442695, %v290_v13 }
 0x17e   : > { %487 = vpow2.f32 %v291_v14 }
 0x188   : > { %v488_v15 = vpop.eup %487 }
 0x189   : > { %475 = vmatmul.mubr.msk.f32.vlgmr.msra.gmra.mrb[0].mxu1 %vm203_vm1, %v488_v15  ;;  %v366_v16 = vsel %vm203_vm1, %v488_v15, 0.0 }
 0x18a   : > { %367 = vadd.xlane.f32.xlu0 %v366_v16 }
 0x217   : > { %v368_v17 = vpop.xlane.xlu0 %367 }
 0x218   : > { %489 = vrcp.f32 %v368_v17 }
 0x222   : > { %v490_v18 = vpop.eup %489 }
 0x25c   : > { %v362_v19 = vpop.f32.mrb[0].mxu1 }
 0x25d   : > { %v370_v20 = vmul.f32 %v490_v18, %v362_v19  ;;  %v476_v21 = vpop.f32.mrb[1].mxu1 }
 0x25f   : > { %371 = vst.msk [vmem:[%s199_s26] sm:$0xff] %vm203_vm1, %v370_v20 }
 0x260 PF: > { %s13_s12 = sadd.s32 1, %s497_s12  }
 0x261   : > { %p10_p4 = scmp.ge.s32.totalorder %s13_s12, 10  }
 0x263   :  { %12 = sbr.rel (!%p10_p4) target bundleno = 1 (0x1), region = 68 }

// kernel: depth_transformer_forward.27
= control target key start
LH: loop header
LB: loop body
LE: loop exit
PB: predicated region body
PF: predicated region fallthrough
CT: control target
= control target key end

     0   :  { %7 = vsyncpa [#allocation4], 0  ;;  %s370_s0 = inlined_call_operand.hbm [shape: f32[16,64], index: 0, kind: input, shape index: {}]   ;;  %s371_s1 = inlined_call_operand.hbm [shape: f32[64,32], index: 1, kind: input, shape index: {}]   ;;  %s372_s2 = inlined_call_operand.hbm [shape: f32[16,32], index: 2, kind: output, shape index: {}]  }
   0x1   :  { %8 = vsyncpa [#allocation7], 0 }
   0x2   :  { %9 = vsyncpa [#allocation5], 0  ;;  %s296_s9 = smov [#allocation3]   ;;  %s224_s13 = scalar_lea.hbm %s370_s0, 256 }
   0x3   :  { %s15_s10 = sshll.u32 %s296_s9, 4  ;;  %p225_p0 = scmp.ne.s32.totalorder %s370_s0, %s224_s13  ;;  %s16_s10 = int_to_ptr.vmem [resolvable:$true] %s15_s10 }
   0x4   :  { %p228_p1 = scmp.lt.u32.totalorder %s224_s13, %s370_s0 }
   0x6   :  { %p230_p2 = pnand %p228_p1, %p225_p0 }
   0x8   :  { %233 = shalt.err (!%p230_p2)
}
   0x9   :  { %s234_s18 = scalar_lea.vmem %s16_s10, 256  ;;  %p239_p4 = scmp.lt.s32.totalorder %s16_s10, %s16_s10 }
   0xa   :  { %p235_p3 = scmp.ne.s32.totalorder %s16_s10, %s234_s18  ;;  %p240_p5 = scmp.lt.s32.totalorder %s234_s18, %s234_s18 }
   0xc   :  { %p241_p6 = por %p240_p5, %p239_p4 }
   0xe   :  { %p242_p7 = pnand %p241_p6, %p235_p3 }
  0x10   :  { %245 = shalt.err (!%p242_p7)
}
  0x11   :  { %s297_s19 = smov 128   ;;  %s298_s20 = smov 8  }
  0x12   :  { %21 = dma.hbm_to_vmem [thread:$0]  %s370_s0, 256, %s16_s10, [#allocation4], %s297_s19, %s297_s19, %s298_s20  }
  0x13   :  { %s299_s23 = smov [#allocation6]   ;;  %s246_s27 = scalar_lea.hbm %s371_s1, 1024 }
  0x14   :  { %s27_s24 = sshll.u32 %s299_s23, 4  ;;  %p247_p8 = scmp.ne.s32.totalorder %s371_s1, %s246_s27  ;;  %s28_s24 = int_to_ptr.vmem [resolvable:$true] %s27_s24 }
  0x15   :  { %p250_p9 = scmp.lt.u32.totalorder %s246_s27, %s371_s1 }
  0x17   :  { %p252_p10 = pnand %p250_p9, %p247_p8 }
  0x19   :  { %255 = shalt.err (!%p252_p10)
}
  0x1a   :  { %s256_s4 = scalar_lea.vmem %s28_s24, 1024  ;;  %p261_p12 = scmp.lt.s32.totalorder %s28_s24, %s28_s24 }
  0x1b   :  { %p257_p11 = scmp.ne.s32.totalorder %s28_s24, %s256_s4  ;;  %p262_p13 = scmp.lt.s32.totalorder %s256_s4, %s256_s4 }
  0x1d   :  { %p263_p0 = por %p262_p13, %p261_p12 }
  0x1f   :  { %p264_p1 = pnand %p263_p0, %p257_p11 }
  0x21   :  { %267 = shalt.err (!%p264_p1)
}
  0x22   :  { %33 = dma.hbm_to_vmem [thread:$0]  %s371_s1, 1024, %s28_s24, [#allocation7], %s297_s19, %s297_s19, %s298_s20  }
  0x23   :  { %290 = dma.done.wait [#allocation4], 256  }
  0x24   :  { %291 = vsyncadd [#allocation4], 4294967040 }
  0x25   :  { %292 = dma.done.wait [#allocation7], 1024  }
  0x26   :  { %293 = vsyncadd [#allocation7], 4294966272  ;;  %vm44_vm0 = vcmask 261120   ;;  %v300_v0 = vmov 0.0   ;;  %v51_v1 = vld [vmem:[#allocation6] sm:$0xff]  ;;  %v52_v2 = vld [vmem:[#allocation6 + $0x8] sm:$0xff] }
  0x27   :  { %46 = vst.msk [vmem:[#allocation2 + $0x8] sm:$0xff] %vm44_vm0, %v300_v0  ;;  %45 = vst.msk [vmem:[#allocation2] sm:$0xff] %vm44_vm0, %v300_v0  ;;  %v53_v3 = vld [vmem:[#allocation6 + $0x10] sm:$0xff]  ;;  %vm59_vm1 = vcmask 523264   ;;  %v202_v4 = vpack.c.bf16 %v52_v2, %v51_v1  ;;  %v54_v5 = vld [vmem:[#allocation6 + $0x18] sm:$0xff]  ;;  %s301_s1 = smov [#allocation8]  }
  0x28   :  { %v206_v6 = vpack.c.bf16 %v54_v5, %v53_v3  ;;  %v55_v7 = vld [vmem:[#allocation6 + $0x20] sm:$0xff]  ;;  %v56_v8 = vld [vmem:[#allocation6 + $0x28] sm:$0xff]  ;;  %v49_v9 = vld [vmem:[#allocation3] sm:$0xff]  ;;  %s158_s6 = sshll.u32 %s301_s1, 4  ;;  %s159_s6 = int_to_ptr.vmem [resolvable:$true] %s158_s6 }
  0x29   :  { %203 = vmatprep.subr.bf16.mxu0 %v202_v4  ;;  %199 = vmatprep.mubr.msk.f32.mxu0 %vm59_vm1, %v49_v9  ;;  %v210_v10 = vpack.c.bf16 %v56_v8, %v55_v7  ;;  %v57_v11 = vld [vmem:[#allocation6 + $0x30] sm:$0xff]  ;;  %v58_v12 = vld [vmem:[#allocation6 + $0x38] sm:$0xff]  ;;  %s268_s7 = scalar_lea.vmem %s159_s6, 256  ;;  %p273_p3 = scmp.lt.s32.totalorder %s159_s6, %s159_s6 }
  0x2a   :  { %205 = vmatpush3.bf16.msra.mxu0 %v202_v4  ;;  %v214_v13 = vpack.c.bf16 %v58_v12, %v57_v11  ;;  %v50_v14 = vld [vmem:[#allocation3 + $0x8] sm:$0xff]  ;;  %p269_p2 = scmp.ne.s32.totalorder %s159_s6, %s268_s7  ;;  %p274_p4 = scmp.lt.s32.totalorder %s268_s7, %s268_s7 }
  0x2b   :  { %207 = vmatprep.subr.bf16.mxu0 %v206_v6 }
  0x2c   :  { %p275_p5 = por %p274_p4, %p273_p3 }
  0x2e   :  { %209 = vmatpush3.bf16.msra.mxu0 %v206_v6  ;;  %v48_v15 = vld [vmem:[#allocation2 + $0x8] sm:$0xff]  ;;  %v47_v16 = vld [vmem:[#allocation2] sm:$0xff]  ;;  %p276_p6 = pnand %p275_p5, %p269_p2 }
  0x2f   :  { %211 = vmatprep.subr.bf16.mxu0 %v210_v10 }
  0x32   :  { %213 = vmatpush3.bf16.msra.mxu0 %v210_v10 }
  0x33   :  { %215 = vmatprep.subr.bf16.mxu0 %v214_v13 }
  0x36   :  { %217 = vmatpush3.bf16.msra.mxu0 %v214_v13 }
  0x39   :  { %200 = vmatmul.mubr.msk.f32.vlgmr.msra.gmra.mrb[0].mxu0 %vm59_vm1, %v50_v14 }
 0x10c   :  { %v201_v17 = vpop.f32.mrb[0].mxu0 }
 0x10d   :  { %v142_v18 = vadd.f32 %v201_v17, %v48_v15  ;;  %v132_v19 = vpop.f32.mrb[1].mxu0 }
 0x10e   :  { %v141_v20 = vadd.f32 %v132_v19, %v47_v16 }
 0x10f   :  { %145 = vst.msk [vmem:[#allocation2 + $0x8] sm:$0xff] %vm44_vm0, %v142_v18 }
 0x110   :  { %144 = vst.msk [vmem:[#allocation2] sm:$0xff] %vm44_vm0, %v141_v20 }
 0x116   :  { %v150_v21 = vld [vmem:[#allocation2 + $0x8] sm:$0xff] }
 0x117   :  { %v149_v22 = vld [vmem:[#allocation2] sm:$0xff]  ;;  %152 = vst.msk [vmem:[#allocation8 + $0x8] sm:$0xff] %vm44_vm0, %v150_v21 }
 0x118   :  { %151 = vst.msk [vmem:[#allocation8] sm:$0xff] %vm44_vm0, %v149_v22 }
 0x119   :  { %279 = shalt.err (!%p276_p6)
}
 0x11a   :  { %s280_s10 = scalar_lea.hbm %s372_s2, 256 }
 0x11b   :  { %p281_p7 = scmp.ne.s32.totalorder %s372_s2, %s280_s10  ;;  %p284_p8 = scmp.lt.u32.totalorder %s280_s10, %s372_s2 }
 0x11d   :  { %p286_p9 = pnand %p284_p8, %p281_p7 }
 0x11f   :  { %289 = shalt.err (!%p286_p9)
}
 0x120   :  { %164 = dma.vmem_to_hbm [thread:$0]  %s159_s6, 256, %s372_s2, [#allocation5], %s297_s19, %s297_s19, %s298_s20  }
 0x121   :  { %294 = dma.done.wait [#allocation5], 256  }
 0x122   :  { %295 = vsyncadd [#allocation5], 4294967040 }
 0x123   :  { %168 = vsyncpa [#allocation4], 1 }
 0x124   :  { %169 = vsyncpa [#allocation7], 1 }
 0x125   :  { %170 = vsyncpa [#allocation5], 1 }

// kernel: depth_transformer_forward.30
= control target key start
LH: loop header
LB: loop body
LE: loop exit
PB: predicated region body
PF: predicated region fallthrough
CT: control target
= control target key end

     0   :  { %7 = vsyncpa [#allocation4], 0  ;;  %s345_s0 = inlined_call_operand.hbm [shape: f32[16,32], index: 0, kind: input, shape index: {}]   ;;  %s346_s1 = inlined_call_operand.hbm [shape: f32[32,32], index: 1, kind: input, shape index: {}]   ;;  %s347_s2 = inlined_call_operand.hbm [shape: f32[16,32], index: 2, kind: output, shape index: {}]  }
   0x1   :  { %8 = vsyncpa [#allocation7], 0 }
   0x2   :  { %9 = vsyncpa [#allocation5], 0  ;;  %s271_s9 = smov [#allocation3]   ;;  %s199_s13 = scalar_lea.hbm %s345_s0, 256 }
   0x3   :  { %s15_s10 = sshll.u32 %s271_s9, 4  ;;  %p200_p0 = scmp.ne.s32.totalorder %s345_s0, %s199_s13  ;;  %s16_s10 = int_to_ptr.vmem [resolvable:$true] %s15_s10 }
   0x4   :  { %p203_p1 = scmp.lt.u32.totalorder %s199_s13, %s345_s0 }
   0x6   :  { %p205_p2 = pnand %p203_p1, %p200_p0 }
   0x8   :  { %208 = shalt.err (!%p205_p2)
}
   0x9   :  { %s209_s18 = scalar_lea.vmem %s16_s10, 256  ;;  %p214_p4 = scmp.lt.s32.totalorder %s16_s10, %s16_s10 }
   0xa   :  { %p210_p3 = scmp.ne.s32.totalorder %s16_s10, %s209_s18  ;;  %p215_p5 = scmp.lt.s32.totalorder %s209_s18, %s209_s18 }
   0xc   :  { %p216_p6 = por %p215_p5, %p214_p4 }
   0xe   :  { %p217_p7 = pnand %p216_p6, %p210_p3 }
  0x10   :  { %220 = shalt.err (!%p217_p7)
}
  0x11   :  { %s272_s19 = smov 128   ;;  %s273_s20 = smov 8  }
  0x12   :  { %21 = dma.hbm_to_vmem [thread:$0]  %s345_s0, 256, %s16_s10, [#allocation4], %s272_s19, %s272_s19, %s273_s20  }
  0x13   :  { %s274_s23 = smov [#allocation6]   ;;  %s221_s27 = scalar_lea.hbm %s346_s1, 512 }
  0x14   :  { %s27_s24 = sshll.u32 %s274_s23, 4  ;;  %p222_p8 = scmp.ne.s32.totalorder %s346_s1, %s221_s27  ;;  %s28_s24 = int_to_ptr.vmem [resolvable:$true] %s27_s24 }
  0x15   :  { %p225_p9 = scmp.lt.u32.totalorder %s221_s27, %s346_s1 }
  0x17   :  { %p227_p10 = pnand %p225_p9, %p222_p8 }
  0x19   :  { %230 = shalt.err (!%p227_p10)
}
  0x1a   :  { %s231_s4 = scalar_lea.vmem %s28_s24, 512  ;;  %p236_p12 = scmp.lt.s32.totalorder %s28_s24, %s28_s24 }
  0x1b   :  { %p232_p11 = scmp.ne.s32.totalorder %s28_s24, %s231_s4  ;;  %p237_p13 = scmp.lt.s32.totalorder %s231_s4, %s231_s4 }
  0x1d   :  { %p238_p0 = por %p237_p13, %p236_p12 }
  0x1f   :  { %p239_p1 = pnand %p238_p0, %p232_p11 }
  0x21   :  { %242 = shalt.err (!%p239_p1)
}
  0x22   :  { %33 = dma.hbm_to_vmem [thread:$0]  %s346_s1, 512, %s28_s24, [#allocation7], %s272_s19, %s272_s19, %s273_s20  }
  0x23   :  { %265 = dma.done.wait [#allocation4], 256  }
  0x24   :  { %266 = vsyncadd [#allocation4], 4294967040 }
  0x25   :  { %267 = dma.done.wait [#allocation7], 512  }
  0x26   :  { %268 = vsyncadd [#allocation7], 4294966784  ;;  %vm44_vm0 = vcmask 261120   ;;  %v275_v0 = vmov 0.0   ;;  %v51_v1 = vld [vmem:[#allocation6] sm:$0xff]  ;;  %v52_v2 = vld [vmem:[#allocation6 + $0x8] sm:$0xff] }
  0x27   :  { %46 = vst.msk [vmem:[#allocation2 + $0x8] sm:$0xff] %vm44_vm0, %v275_v0  ;;  %45 = vst.msk [vmem:[#allocation2] sm:$0xff] %vm44_vm0, %v275_v0  ;;  %v53_v3 = vld [vmem:[#allocation6 + $0x10] sm:$0xff]  ;;  %v185_v4 = vpack.c.bf16 %v52_v2, %v51_v1  ;;  %v54_v5 = vld [vmem:[#allocation6 + $0x18] sm:$0xff]  ;;  %s276_s1 = smov [#allocation8]  }
  0x28   :  { %v49_v6 = vld [vmem:[#allocation3] sm:$0xff]  ;;  %v189_v7 = vpack.c.bf16 %v54_v5, %v53_v3  ;;  %v50_v8 = vld [vmem:[#allocation3 + $0x8] sm:$0xff]  ;;  %s153_s6 = sshll.u32 %s276_s1, 4  ;;  %s154_s6 = int_to_ptr.vmem [resolvable:$true] %s153_s6 }
  0x29   :  { %182 = vmatprep.mubr.msk.f32.mxu0 %vm44_vm0, %v49_v6  ;;  %186 = vmatprep.subr.bf16.mxu0 %v185_v4  ;;  %s243_s7 = scalar_lea.vmem %s154_s6, 256  ;;  %p248_p3 = scmp.lt.s32.totalorder %s154_s6, %s154_s6 }
  0x2a   :  { %188 = vmatpush3.bf16.msra.mxu0 %v185_v4  ;;  %p244_p2 = scmp.ne.s32.totalorder %s154_s6, %s243_s7  ;;  %p249_p4 = scmp.lt.s32.totalorder %s243_s7, %s243_s7 }
  0x2b   :  { %190 = vmatprep.subr.bf16.mxu0 %v189_v7 }
  0x2c   :  { %p250_p5 = por %p249_p4, %p248_p3 }
  0x2e   :  { %192 = vmatpush3.bf16.msra.mxu0 %v189_v7  ;;  %v48_v9 = vld [vmem:[#allocation2 + $0x8] sm:$0xff]  ;;  %v47_v10 = vld [vmem:[#allocation2] sm:$0xff]  ;;  %p251_p6 = pnand %p250_p5, %p244_p2 }
  0x31   :  { %183 = vmatmul.mubr.msk.f32.vlgmr.msra.gmra.mrb[0].mxu0 %vm44_vm0, %v50_v8 }
 0x104   :  { %v184_v11 = vpop.f32.mrb[0].mxu0 }
 0x105   :  { %v138_v12 = vadd.f32 %v184_v11, %v48_v9  ;;  %v128_v13 = vpop.f32.mrb[1].mxu0 }
 0x106   :  { %v137_v14 = vadd.f32 %v128_v13, %v47_v10 }
 0x107   :  { %140 = vst.msk [vmem:[#allocation2 + $0x8] sm:$0xff] %vm44_vm0, %v138_v12 }
 0x108   :  { %139 = vst.msk [vmem:[#allocation2] sm:$0xff] %vm44_vm0, %v137_v14 }
 0x10e   :  { %v145_v15 = vld [vmem:[#allocation2 + $0x8] sm:$0xff] }
 0x10f   :  { %v144_v16 = vld [vmem:[#allocation2] sm:$0xff]  ;;  %147 = vst.msk [vmem:[#allocation8 + $0x8] sm:$0xff] %vm44_vm0, %v145_v15 }
 0x110   :  { %146 = vst.msk [vmem:[#allocation8] sm:$0xff] %vm44_vm0, %v144_v16 }
 0x111   :  { %254 = shalt.err (!%p251_p6)
}
 0x112   :  { %s255_s10 = scalar_lea.hbm %s347_s2, 256 }
 0x113   :  { %p256_p7 = scmp.ne.s32.totalorder %s347_s2, %s255_s10  ;;  %p259_p8 = scmp.lt.u32.totalorder %s255_s10, %s347_s2 }
 0x115   :  { %p261_p9 = pnand %p259_p8, %p256_p7 }
 0x117   :  { %264 = shalt.err (!%p261_p9)
}
 0x118   :  { %159 = dma.vmem_to_hbm [thread:$0]  %s154_s6, 256, %s347_s2, [#allocation5], %s272_s19, %s272_s19, %s273_s20  }
 0x119   :  { %269 = dma.done.wait [#allocation5], 256  }
 0x11a   :  { %270 = vsyncadd [#allocation5], 4294967040 }
 0x11b   :  { %163 = vsyncpa [#allocation4], 1 }
 0x11c   :  { %164 = vsyncpa [#allocation7], 1 }
 0x11d   :  { %165 = vsyncpa [#allocation5], 1 }

// kernel: depth_transformer_forward.44
= control target key start
LH: loop header
LB: loop body
LE: loop exit
PB: predicated region body
PF: predicated region fallthrough
CT: control target
= control target key end

     0   :  { %vm15_vm0 = vcmask 261120   ;;  %s85_s0 = inlined_call_operand.vmem [shape: f32[16,32], index: 0, kind: input, shape index: {}]   ;;  %s86_s1 = inlined_call_operand.vmem [shape: f32[1,32], index: 1, kind: input, shape index: {}]   ;;  %s87_s2 = inlined_call_operand.vmem [shape: f32[16,32], index: 2, kind: output, shape index: {}]  }
   0x1   :  { %v11_v0 = vld [vmem:[%s85_s0] sm:$0xff]  ;;  %v12_v1 = vld [vmem:[%s85_s0 + $0x8] sm:$0xff] }
   0x2   :  { %v13_v2 = vmul.f32 %v11_v0, %v11_v0  ;;  %v14_v3 = vmul.f32 %v12_v1, %v12_v1  ;;  %v46_v13 = vld [vmem:[%s86_s1] ss:$0 sm:$0xff] }
   0x4   :  { %v16_v4 = vsel %vm15_vm0, %v13_v2, 0.0  ;;  %v19_v5 = vsel %vm15_vm0, %v14_v3, 0.0 }
   0x5   :  { %17 = vadd.xlane.f32.xlu0 %v16_v4 }
   0x9   :  { %20 = vadd.xlane.f32.xlu0 %v19_v5 }
  0x92   :  { %v18_v6 = vpop.xlane.xlu0 %17 }
  0x93   :  { %v23_v7 = vmul.f32 0.03125, %v18_v6 }
  0x95   :  { %v25_v8 = vadd.f32 1e-05, %v23_v7 }
  0x96   :  { %v21_v9 = vpop.xlane.xlu0 %20 }
  0x97   :  { %47 = vrsqrt.f32 %v25_v8  ;;  %v24_v10 = vmul.f32 0.03125, %v21_v9 }
  0x99   :  { %v26_v11 = vadd.f32 1e-05, %v24_v10 }
  0x9b   :  { %49 = vrsqrt.f32 %v26_v11 }
  0xa1   :  { %v48_v12 = vpop.eup %47 }
  0xa2   :  { %v29_v14 = vmul.f32 %v48_v12, %v11_v0 }
  0xa4   :  { %v38_v15 = vmul.f32 %v46_v13, %v29_v14 }
  0xa5   :  { %v50_v16 = vpop.eup %49 }
  0xa6   :  { %40 = vst.msk [vmem:[%s87_s2] sm:$0xff] %vm15_vm0, %v38_v15  ;;  %v30_v17 = vmul.f32 %v50_v16, %v12_v1 }
  0xa8   :  { %v39_v18 = vmul.f32 %v46_v13, %v30_v17 }
  0xaa   :  { %41 = vst.msk [vmem:[%s87_s2 + $0x8] sm:$0xff] %vm15_vm0, %v39_v18 }

// kernel: depth_transformer_forward.35
= control target key start
LH: loop header
LB: loop body
LE: loop exit
PB: predicated region body
PF: predicated region fallthrough
CT: control target
= control target key end

     0   :  { %9 = vsyncpa [#allocation4], 0  ;;  %s793_s0 = inlined_call_operand.hbm [shape: f32[16,32], index: 0, kind: input, shape index: {}]   ;;  %s794_s1 = inlined_call_operand.hbm [shape: f32[32,128], index: 1, kind: input, shape index: {}]   ;;  %s795_s2 = inlined_call_operand.hbm [shape: f32[32,128], index: 2, kind: input, shape index: {}]   ;;  %s796_s3 = inlined_call_operand.hbm [shape: f32[128,32], index: 3, kind: input, shape index: {}]   ;;  %s797_s4 = inlined_call_operand.hbm [shape: f32[16,32], index: 4, kind: output, shape index: {}]  }
   0x1   :  { %10 = vsyncpa [#allocation7], 0 }
   0x2   :  { %11 = vsyncpa [#allocation10], 0 }
   0x3   :  { %12 = vsyncpa [#allocation5], 0  ;;  %s661_s15 = smov [#allocation6]   ;;  %s662_s17 = smov [#allocation3]  }
   0x4   :  { %s30_s16 = sshll.u32 %s661_s15, 4  ;;  %s18_s18 = sshll.u32 %s662_s17, 4  ;;  %s31_s16 = int_to_ptr.vmem [resolvable:$true] %s30_s16  ;;  %s694_s18 = int_to_ptr.vmem [resolvable:$true] %s18_s18 }
   0x5   :  { %s543_s21 = scalar_lea.hbm %s794_s1, 512 }
   0x6   :  { %p544_p0 = scmp.ne.s32.totalorder %s794_s1, %s543_s21  ;;  %p547_p1 = scmp.lt.u32.totalorder %s543_s21, %s794_s1 }
   0x8   :  { %p549_p2 = pnand %p547_p1, %p544_p0 }
   0xa   :  { %552 = shalt.err (!%p549_p2)
}
   0xb   :  { %s553_s26 = scalar_lea.vmem %s31_s16, 512  ;;  %p558_p4 = scmp.lt.s32.totalorder %s31_s16, %s31_s16 }
   0xc   :  { %p554_p3 = scmp.ne.s32.totalorder %s31_s16, %s553_s26  ;;  %p559_p5 = scmp.lt.s32.totalorder %s553_s26, %s553_s26 }
   0xe   :  { %p560_p6 = por %p559_p5, %p558_p4 }
  0x10   :  { %p561_p7 = pnand %p560_p6, %p554_p3 }
  0x12   :  { %564 = shalt.err (!%p561_p7)
}
  0x13   :  { %s663_s27 = smov 128   ;;  %s664_s28 = smov 8  }
  0x14   :  { %36 = dma.hbm_to_vmem [thread:$0]  %s794_s1, 512, %s31_s16, [#allocation7], %s663_s27, %s663_s27, %s664_s28  }
  0x15   :  { %s565_s7 = scalar_lea.hbm %s793_s0, 256 }
  0x16   :  { %p566_p8 = scmp.ne.s32.totalorder %s793_s0, %s565_s7  ;;  %p569_p9 = scmp.lt.u32.totalorder %s565_s7, %s793_s0 }
  0x18   :  { %p571_p10 = pnand %p569_p9, %p566_p8 }
  0x1a   :  { %574 = shalt.err (!%p571_p10)
}
  0x1b   :  { %s575_s12 = scalar_lea.vmem %s694_s18, 256  ;;  %p580_p12 = scmp.lt.s32.totalorder %s694_s18, %s694_s18 }
  0x1c   :  { %p576_p11 = scmp.ne.s32.totalorder %s694_s18, %s575_s12  ;;  %p581_p13 = scmp.lt.s32.totalorder %s575_s12, %s575_s12 }
  0x1e   :  { %p582_p0 = por %p581_p13, %p580_p12 }
  0x20   :  { %p583_p1 = pnand %p582_p0, %p576_p11 }
  0x22   :  { %586 = shalt.err (!%p583_p1)
}
  0x23   :  { %24 = dma.hbm_to_vmem [thread:$0]  %s793_s0, 256, %s694_s18, [#allocation4], %s663_s27, %s663_s27, %s664_s28  }
  0x24   :  { %s665_s14 = smov [#allocation8]   ;;  %s666_s16 = smov [#allocation9]  }
  0x25   :  { %s42_s15 = sshll.u32 %s665_s14, 4  ;;  %s54_s17 = sshll.u32 %s666_s16, 4  ;;  %s43_s15 = int_to_ptr.vmem [resolvable:$true] %s42_s15  ;;  %s731_s17 = int_to_ptr.vmem [resolvable:$true] %s54_s17 }
  0x26   :  { %s587_s21 = scalar_lea.hbm %s795_s2, 512 }
  0x27   :  { %p588_p2 = scmp.ne.s32.totalorder %s795_s2, %s587_s21  ;;  %p591_p3 = scmp.lt.u32.totalorder %s587_s21, %s795_s2 }
  0x29   :  { %p593_p4 = pnand %p591_p3, %p588_p2 }
  0x2b   :  { %596 = shalt.err (!%p593_p4)
}
  0x2c   :  { %s597_s0 = scalar_lea.vmem %s43_s15, 512  ;;  %p602_p6 = scmp.lt.s32.totalorder %s43_s15, %s43_s15 }
  0x2d   :  { %p598_p5 = scmp.ne.s32.totalorder %s43_s15, %s597_s0  ;;  %p603_p7 = scmp.lt.s32.totalorder %s597_s0, %s597_s0 }
  0x2f   :  { %p604_p8 = por %p603_p7, %p602_p6 }
  0x31   :  { %p605_p9 = pnand %p604_p8, %p598_p5 }
  0x33   :  { %608 = shalt.err (!%p605_p9)
}
  0x34   :  { %48 = dma.hbm_to_vmem [thread:$0]  %s795_s2, 512, %s43_s15, [#allocation7], %s663_s27, %s663_s27, %s664_s28  }
  0x35   :  { %s609_s5 = scalar_lea.hbm %s796_s3, 2048 }
  0x36   :  { %p610_p10 = scmp.ne.s32.totalorder %s796_s3, %s609_s5  ;;  %p613_p11 = scmp.lt.u32.totalorder %s609_s5, %s796_s3 }
  0x38   :  { %p615_p12 = pnand %p613_p11, %p610_p10 }
  0x3a   :  { %618 = shalt.err (!%p615_p12)
}
  0x3b   :  { %s619_s10 = scalar_lea.vmem %s731_s17, 2048  ;;  %p624_p0 = scmp.lt.s32.totalorder %s731_s17, %s731_s17 }
  0x3c   :  { %p620_p13 = scmp.ne.s32.totalorder %s731_s17, %s619_s10  ;;  %p625_p1 = scmp.lt.s32.totalorder %s619_s10, %s619_s10 }
  0x3e   :  { %p626_p2 = por %p625_p1, %p624_p0 }
  0x40   :  { %p627_p3 = pnand %p626_p2, %p620_p13 }
  0x42   :  { %630 = shalt.err (!%p627_p3)
}
  0x43   :  { %60 = dma.hbm_to_vmem [thread:$0]  %s796_s3, 2048, %s731_s17, [#allocation10], %s663_s27, %s663_s27, %s664_s28  }
  0x44   :  { %653 = dma.done.wait [#allocation4], 256  }
  0x45   :  { %654 = vsyncadd [#allocation4], 4294967040 }
  0x46   :  { %655 = dma.done.wait [#allocation7], 1024  }
  0x47   :  { %656 = vsyncadd [#allocation7], 4294966272 }
  0x48   :  { %657 = dma.done.wait [#allocation10], 2048  }
  0x49   :  { %658 = vsyncadd [#allocation10], 4294965248  ;;  %vm77_vm0 = vcmask 261120   ;;  %v82_v0 = vld [vmem:[#allocation6] sm:$0xff]  ;;  %v83_v1 = vld [vmem:[#allocation6 + $0x8] sm:$0xff]  ;;  %v667_v38 = vmov 0.0  }
  0x4a   :  { %v84_v2 = vld [vmem:[#allocation6 + $0x10] sm:$0xff]  ;;  %v479_v3 = vpack.c.bf16 %v83_v1, %v82_v0  ;;  %v85_v4 = vld [vmem:[#allocation6 + $0x18] sm:$0xff]  ;;  %v168_v7 = vld [vmem:[#allocation8] sm:$0xff]  ;;  %79 = vst.msk [vmem:[#allocation2 + $0x8] sm:$0xff] %vm77_vm0, %v667_v38  ;;  %s668_s3 = smov [#allocation11]  }
  0x4b   :  { %v80_v5 = vld [vmem:[#allocation3] sm:$0xff]  ;;  %v483_v6 = vpack.c.bf16 %v85_v4, %v84_v2  ;;  %v169_v8 = vld [vmem:[#allocation8 + $0x8] sm:$0xff]  ;;  %v171_v11 = vld [vmem:[#allocation8 + $0x18] sm:$0xff]  ;;  %78 = vst.msk [vmem:[#allocation2] sm:$0xff] %vm77_vm0, %v667_v38  ;;  %s372_s12 = sshll.u32 %s668_s3, 4  ;;  %s373_s12 = int_to_ptr.vmem [resolvable:$true] %s372_s12 }
  0x4c   :  { %430 = vmatprep.mubr.msk.f32.mxu1 %vm77_vm0, %v80_v5  ;;  %480 = vmatprep.subr.bf16.mxu1 %v479_v3  ;;  %v487_v9 = vpack.c.bf16 %v169_v8, %v168_v7  ;;  %v170_v10 = vld [vmem:[#allocation8 + $0x10] sm:$0xff]  ;;  %v81_v12 = vld [vmem:[#allocation3 + $0x8] sm:$0xff]  ;;  %v265_v14 = vld [vmem:[#allocation9] sm:$0xff]  ;;  %s631_s1 = scalar_lea.vmem %s373_s12, 256  ;;  %p636_p5 = scmp.lt.s32.totalorder %s373_s12, %s373_s12 }
  0x4d   :  { %482 = vmatpush3.bf16.msra.mxu1 %v479_v3  ;;  %v491_v13 = vpack.c.bf16 %v171_v11, %v170_v10  ;;  %v266_v15 = vld [vmem:[#allocation9 + $0x8] sm:$0xff]  ;;  %v267_v17 = vld [vmem:[#allocation9 + $0x10] sm:$0xff]  ;;  %v268_v18 = vld [vmem:[#allocation9 + $0x18] sm:$0xff]  ;;  %p632_p4 = scmp.ne.s32.totalorder %s373_s12, %s631_s1  ;;  %p637_p6 = scmp.lt.s32.totalorder %s631_s1, %s631_s1 }
  0x4e   :  { %484 = vmatprep.subr.bf16.mxu1 %v483_v6  ;;  %v495_v16 = vpack.c.bf16 %v266_v15, %v265_v14  ;;  %v499_v19 = vpack.c.bf16 %v268_v18, %v267_v17  ;;  %v269_v20 = vld [vmem:[#allocation9 + $0x20] sm:$0xff]  ;;  %v270_v21 = vld [vmem:[#allocation9 + $0x28] sm:$0xff]  ;;  %v271_v23 = vld [vmem:[#allocation9 + $0x30] sm:$0xff] }
  0x4f   :  { %v503_v22 = vpack.c.bf16 %v270_v21, %v269_v20  ;;  %v272_v24 = vld [vmem:[#allocation9 + $0x38] sm:$0xff]  ;;  %v273_v26 = vld [vmem:[#allocation9 + $0x40] sm:$0xff]  ;;  %v274_v27 = vld [vmem:[#allocation9 + $0x48] sm:$0xff]  ;;  %p638_p7 = por %p637_p6, %p636_p5 }
  0x50   :  { %496 = vmatprep.subr.bf16.mxu0 %v495_v16  ;;  %v507_v25 = vpack.c.bf16 %v272_v24, %v271_v23  ;;  %v511_v28 = vpack.c.bf16 %v274_v27, %v273_v26  ;;  %v275_v29 = vld [vmem:[#allocation9 + $0x50] sm:$0xff]  ;;  %v276_v30 = vld [vmem:[#allocation9 + $0x58] sm:$0xff]  ;;  %v277_v32 = vld [vmem:[#allocation9 + $0x60] sm:$0xff] }
  0x51   :  { %486 = vmatpush3.bf16.msra.mxu1 %v483_v6  ;;  %498 = vmatpush3.bf16.msra.mxu0 %v495_v16  ;;  %v515_v31 = vpack.c.bf16 %v276_v30, %v275_v29  ;;  %v278_v33 = vld [vmem:[#allocation9 + $0x68] sm:$0xff]  ;;  %v279_v35 = vld [vmem:[#allocation9 + $0x70] sm:$0xff]  ;;  %v280_v36 = vld [vmem:[#allocation9 + $0x78] sm:$0xff]  ;;  %p639_p8 = pnand %p638_p7, %p632_p4 }
  0x52   :  { %488 = vmatprep.subr.bf16.mxu1 %v487_v9  ;;  %500 = vmatprep.subr.bf16.mxu0 %v499_v19  ;;  %v519_v34 = vpack.c.bf16 %v278_v33, %v277_v32  ;;  %v523_v37 = vpack.c.bf16 %v280_v36, %v279_v35  ;;  %v264_v55 = vld [vmem:[#allocation2 + $0x8] sm:$0xff]  ;;  %v263_v56 = vld [vmem:[#allocation2] sm:$0xff] }
  0x54   :  { %431 = vmatmul.mubr.msk.f32.vlgmr.msra.gmra.mrb[0].mxu1 %vm77_vm0, %v81_v12 }
  0x55   :  { %490 = vmatpush3.bf16.msra.mxu1 %v487_v9  ;;  %441 = vmatprep.mubr.msk.f32.mxu1 %vm77_vm0, %v80_v5 }
  0x56   :  { %492 = vmatprep.subr.bf16.mxu1 %v491_v13  ;;  %502 = vmatpush3.bf16.msra.mxu0 %v499_v19 }
  0x57   :  { %504 = vmatprep.subr.bf16.mxu0 %v503_v22 }
  0x59   :  { %494 = vmatpush3.bf16.msra.mxu1 %v491_v13 }
  0x5a   :  { %506 = vmatpush3.bf16.msra.mxu0 %v503_v22 }
  0x5b   :  { %508 = vmatprep.subr.bf16.mxu0 %v507_v25 }
  0x5c   :  { %442 = vmatmul.mubr.msk.f32.vlgmr.msra.gmra.mrb[2].mxu1 %vm77_vm0, %v81_v12 }
  0x5e   :  { %510 = vmatpush3.bf16.msra.mxu0 %v507_v25 }
  0x5f   :  { %512 = vmatprep.subr.bf16.mxu0 %v511_v28 }
  0x62   :  { %514 = vmatpush3.bf16.msra.mxu0 %v511_v28 }
  0x63   :  { %516 = vmatprep.subr.bf16.mxu0 %v515_v31 }
  0x66   :  { %518 = vmatpush3.bf16.msra.mxu0 %v515_v31 }
  0x67   :  { %520 = vmatprep.subr.bf16.mxu0 %v519_v34 }
  0x6a   :  { %522 = vmatpush3.bf16.msra.mxu0 %v519_v34 }
  0x6b   :  { %524 = vmatprep.subr.bf16.mxu0 %v523_v37 }
  0x6e   :  { %526 = vmatpush3.bf16.msra.mxu0 %v523_v37 }
 0x127   :  { %v432_v39 = vpop.f32.mrb[0].mxu1 }
 0x128   :  { %v159_v40 = vpop.f32.mrb[1].mxu1 }
 0x12f   :  { %v443_v41 = vpop.f32.mrb[2].mxu1 }
 0x130   :  { %v248_v42 = vmul.f32 %v443_v41, %v432_v39  ;;  %v238_v43 = vpop.f32.mrb[3].mxu1 }
 0x131   :  { %v247_v44 = vmul.f32 %v238_v43, %v159_v40 }
 0x132   :  { %v391_v45 = vmul.f32 -1.442695, %v248_v42 }
 0x133   :  { %v390_v46 = vmul.f32 -1.442695, %v247_v44 }
 0x134   :  { %535 = vpow2.f32 %v391_v45 }
 0x135   :  { %537 = vpow2.f32 %v390_v46 }
 0x13e   :  { %v536_v47 = vpop.eup %535 }
 0x13f   :  { %v538_v48 = vpop.eup %537  ;;  %v256_v49 = vadd.f32 1.0, %v536_v47 }
 0x140   :  { %v255_v50 = vadd.f32 1.0, %v538_v48 }
 0x141   :  { %539 = vrcp.f32 %v256_v49 }
 0x142   :  { %541 = vrcp.f32 %v255_v50 }
 0x14b   :  { %v540_v51 = vpop.eup %539 }
 0x14c   :  { %v542_v52 = vpop.eup %541  ;;  %v262_v54 = vmul.f32 %v540_v51, %v248_v42 }
 0x14d   :  { %v261_v53 = vmul.f32 %v542_v52, %v247_v44 }
 0x14f   :  { %476 = vmatprep.mubr.f32.mxu0 %v261_v53 }
 0x150   :  { %477 = vmatmul.mubr.f32.vlgmr.msra.gmra.mrb[0].mxu0 %v262_v54 }
 0x223   :  { %v478_v57 = vpop.f32.mrb[0].mxu0 }
 0x224   :  { %v357_v58 = vadd.f32 %v478_v57, %v264_v55  ;;  %v347_v59 = vpop.f32.mrb[1].mxu0 }
 0x225   :  { %v356_v60 = vadd.f32 %v347_v59, %v263_v56 }
 0x226   :  { %359 = vst.msk [vmem:[#allocation2 + $0x8] sm:$0xff] %vm77_vm0, %v357_v58 }
 0x227   :  { %358 = vst.msk [vmem:[#allocation2] sm:$0xff] %vm77_vm0, %v356_v60 }
 0x22d   :  { %v364_v61 = vld [vmem:[#allocation2 + $0x8] sm:$0xff] }
 0x22e   :  { %v363_v62 = vld [vmem:[#allocation2] sm:$0xff]  ;;  %366 = vst.msk [vmem:[#allocation11 + $0x8] sm:$0xff] %vm77_vm0, %v364_v61 }
 0x22f   :  { %365 = vst.msk [vmem:[#allocation11] sm:$0xff] %vm77_vm0, %v363_v62 }
 0x230   :  { %642 = shalt.err (!%p639_p8)
}
 0x231   :  { %s643_s15 = scalar_lea.hbm %s797_s4, 256 }
 0x232   :  { %p644_p9 = scmp.ne.s32.totalorder %s797_s4, %s643_s15  ;;  %p647_p10 = scmp.lt.u32.totalorder %s643_s15, %s797_s4 }
 0x234   :  { %p649_p11 = pnand %p647_p10, %p644_p9 }
 0x236   :  { %652 = shalt.err (!%p649_p11)
}
 0x237   :  { %378 = dma.vmem_to_hbm [thread:$0]  %s373_s12, 256, %s797_s4, [#allocation5], %s663_s27, %s663_s27, %s664_s28  }
 0x238   :  { %659 = dma.done.wait [#allocation5], 256  }
 0x239   :  { %660 = vsyncadd [#allocation5], 4294967040 }
 0x23a   :  { %382 = vsyncpa [#allocation4], 1 }
 0x23b   :  { %383 = vsyncpa [#allocation7], 1 }
 0x23c   :  { %384 = vsyncpa [#allocation10], 1 }
 0x23d   :  { %385 = vsyncpa [#allocation5], 1 }

// kernel: depth_transformer_forward.48
= control target key start
LH: loop header
LB: loop body
LE: loop exit
PB: predicated region body
PF: predicated region fallthrough
CT: control target
= control target key end

     0   :  { %7 = vsyncpa [#allocation4], 0  ;;  %s315_s0 = inlined_call_operand.hbm [shape: f32[2,32], index: 0, kind: input, shape index: {}]   ;;  %s316_s1 = inlined_call_operand.hbm [shape: f32[32,256], index: 1, kind: input, shape index: {}]   ;;  %s317_s2 = inlined_call_operand.hbm [shape: f32[2,256], index: 2, kind: output, shape index: {}]  }
   0x1   :  { %8 = vsyncpa [#allocation7], 0 }
   0x2   :  { %9 = vsyncpa [#allocation5], 0  ;;  %s250_s9 = smov [#allocation3]   ;;  %s251_s11 = smov [#allocation6]  }
   0x3   :  { %s16_s10 = sshll.u32 %s250_s9, 4  ;;  %s25_s12 = sshll.u32 %s251_s11, 4  ;;  %s17_s10 = int_to_ptr.vmem [resolvable:$true] %s16_s10  ;;  %s272_s12 = int_to_ptr.vmem [resolvable:$true] %s25_s12 }
   0x4   :  { %s178_s15 = scalar_lea.hbm %s315_s0, 32 }
   0x5   :  { %p179_p0 = scmp.ne.s32.totalorder %s315_s0, %s178_s15  ;;  %p182_p1 = scmp.lt.u32.totalorder %s178_s15, %s315_s0 }
   0x7   :  { %p184_p2 = pnand %p182_p1, %p179_p0 }
   0x9   :  { %187 = shalt.err (!%p184_p2)
}
   0xa   :  { %s188_s20 = scalar_lea.vmem %s17_s10, 32  ;;  %p193_p4 = scmp.lt.s32.totalorder %s17_s10, %s17_s10 }
   0xb   :  { %p189_p3 = scmp.ne.s32.totalorder %s17_s10, %s188_s20  ;;  %p194_p5 = scmp.lt.s32.totalorder %s188_s20, %s188_s20 }
   0xd   :  { %p195_p6 = por %p194_p5, %p193_p4 }
   0xf   :  { %p196_p7 = pnand %p195_p6, %p189_p3 }
  0x11   :  { %199 = shalt.err (!%p196_p7)
}
  0x12   :  { %19 = dma.hbm_to_vmem [thread:$0]  %s315_s0, 32, %s17_s10, [#allocation4]  }
  0x13   :  { %s200_s25 = scalar_lea.hbm %s316_s1, 1024 }
  0x14   :  { %p201_p8 = scmp.ne.s32.totalorder %s316_s1, %s200_s25  ;;  %p204_p9 = scmp.lt.u32.totalorder %s200_s25, %s316_s1 }
  0x16   :  { %p206_p10 = pnand %p204_p9, %p201_p8 }
  0x18   :  { %209 = shalt.err (!%p206_p10)
}
  0x19   :  { %s210_s30 = scalar_lea.vmem %s272_s12, 1024  ;;  %p215_p12 = scmp.lt.s32.totalorder %s272_s12, %s272_s12 }
  0x1a   :  { %p211_p11 = scmp.ne.s32.totalorder %s272_s12, %s210_s30  ;;  %p216_p13 = scmp.lt.s32.totalorder %s210_s30, %s210_s30 }
  0x1c   :  { %p217_p0 = por %p216_p13, %p215_p12 }
  0x1e   :  { %p218_p1 = pnand %p217_p0, %p211_p11 }
  0x20   :  { %221 = shalt.err (!%p218_p1)
}
  0x21   :  { %s252_s0 = smov 256   ;;  %s253_s3 = smov 16  }
  0x22   :  { %31 = dma.hbm_to_vmem [thread:$0]  %s316_s1, 1024, %s272_s12, [#allocation7], %s252_s0, %s252_s0, %s253_s3  }
  0x23   :  { %244 = dma.done.wait [#allocation4], 32  }
  0x24   :  { %245 = vsyncadd [#allocation4], 4294967264 }
  0x25   :  { %246 = dma.done.wait [#allocation7], 1024  }
  0x26   :  { %247 = vsyncadd [#allocation7], 4294966272  ;;  %v254_v0 = vmov 0.0   ;;  %v46_v1 = vld [vmem:[#allocation6 + $0x8] sm:$0xff]  ;;  %v48_v2 = vld [vmem:[#allocation6 + $0x18] sm:$0xff]  ;;  %vm53_vm0 = vcmask 261120   ;;  %v134_v16 = vlaneseq }
  0x27   :  { %42 = vst [vmem:[#allocation2] sm:$0xf] %v254_v0  ;;  %121 = vmatprep.mubr.f32.mxu0 %v254_v0  ;;  %v45_v3 = vld [vmem:[#allocation6] sm:$0xff]  ;;  %v163_v4 = vpack.c.bf16 %v48_v2, %v46_v1  ;;  %v47_v5 = vld [vmem:[#allocation6 + $0x10] sm:$0xff]  ;;  %v50_v6 = vld [vmem:[#allocation6 + $0x28] sm:$0xff]  ;;  %s256_s1 = smov [#allocation8]  }
  0x28   :  { %v52_v7 = vld [vmem:[#allocation6 + $0x38] sm:$0xff]  ;;  %v165_v8 = vpack.c.bf16 %v47_v5, %v45_v3  ;;  %v49_v10 = vld [vmem:[#allocation6 + $0x20] sm:$0xff]  ;;  %v51_v11 = vld [vmem:[#allocation6 + $0x30] sm:$0xff]  ;;  %v255_v14 = vmov 1983009808   ;;  %v135_v18 = vshrl.u32 %v134_v16, 7 }
  0x29   :  { %v167_v9 = vpack.c.bf16 %v52_v7, %v50_v6  ;;  %164 = vmatprep.subr.bf16.mxu0 %v163_v4  ;;  %v169_v12 = vpack.c.bf16 %v51_v11, %v49_v10  ;;  %v44_v13 = vld [vmem:[#allocation3] sm:$0x3]  ;;  %v132_v15 = vunpack.c.l.s4 %v255_v14  ;;  %s152_s6 = sshll.u32 %s256_s1, 4  ;;  %s153_s6 = int_to_ptr.vmem [resolvable:$true] %s152_s6 }
  0x2a   :  { %166 = vmatpush1.bf16.msra.mxu0 %v165_v8  ;;  %s222_s7 = scalar_lea.vmem %s153_s6, 64  ;;  %p227_p3 = scmp.lt.s32.totalorder %s153_s6, %s153_s6 }
  0x2b   :  { %168 = vmatprep.subr.bf16.mxu0 %v167_v9  ;;  %v133_v17 = vunpack.c.0.s8 %v132_v15  ;;  %p223_p2 = scmp.ne.s32.totalorder %s153_s6, %s222_s7  ;;  %p228_p4 = scmp.lt.s32.totalorder %s222_s7, %s222_s7 }
  0x2d   :  { %v136_v20 = vsub.s32 %v133_v17, %v135_v18  ;;  %p229_p5 = por %p228_p4, %p227_p3 }
  0x2e   :  { %170 = vmatpush1.bf16.msra.mxu0 %v169_v12  ;;  %v43_v23 = vld [vmem:[#allocation2] sm:$0xf] }
  0x2f   :  { %p230_p6 = pnand %p229_p5, %p223_p2 }
  0x31   :  { %162 = vmatmul.mubr.msk.f32.vlgmr.msra.gmra.mrb[0].mxu0 %vm53_vm0, %v44_v13 }
 0x104   :  { %v123_v19 = vpop.f32.mrb[0].mxu0 }
 0x105   :  { %v125_v21 = vpop.f32.mrb[1].mxu0 }
 0x106   :  { %v130_v22 = vcombine.low %v123_v19, %v125_v21 }
 0x108   :  { %v137_v24 = vrot.slane %v130_v22, %v136_v20 }
 0x10a   :  { %v139_v25 = vadd.f32 %v137_v24, %v43_v23 }
 0x10c   :  { %140 = vst [vmem:[#allocation2] sm:$0xf] %v139_v25 }
 0x113   :  { %v144_v26 = vld [vmem:[#allocation2] sm:$0xf] }
 0x114   :  { %145 = vst [vmem:[#allocation8] sm:$0xf] %v144_v26 }
 0x115   :  { %233 = shalt.err (!%p230_p6)
}
 0x116   :  { %s234_s10 = scalar_lea.hbm %s317_s2, 64 }
 0x117   :  { %p235_p7 = scmp.ne.s32.totalorder %s317_s2, %s234_s10  ;;  %p238_p8 = scmp.lt.u32.totalorder %s234_s10, %s317_s2 }
 0x119   :  { %p240_p9 = pnand %p238_p8, %p235_p7 }
 0x11b   :  { %243 = shalt.err (!%p240_p9)
}
 0x11c   :  { %155 = dma.vmem_to_hbm [thread:$0]  %s153_s6, 64, %s317_s2, [#allocation5]  }
 0x11d   :  { %248 = dma.done.wait [#allocation5], 64  }
 0x11e   :  { %249 = vsyncadd [#allocation5], 4294967232 }
 0x11f   :  { %159 = vsyncpa [#allocation4], 1 }
 0x120   :  { %160 = vsyncpa [#allocation7], 1 }
 0x121   :  { %161 = vsyncpa [#allocation5], 1 }

// kernel: depth_transformer_forward.46
= control target key start
LH: loop header
LB: loop body
LE: loop exit
PB: predicated region body
PF: predicated region fallthrough
CT: control target
= control target key end

     0   :  { %7 = vsyncpa [#allocation4], 0  ;;  %s414_s0 = inlined_call_operand.hbm [shape: f32[2,32], index: 0, kind: input, shape index: {}]   ;;  %s415_s1 = inlined_call_operand.hbm [shape: f32[32,512], index: 1, kind: input, shape index: {}]   ;;  %s416_s2 = inlined_call_operand.hbm [shape: f32[2,512], index: 2, kind: output, shape index: {}]  }
   0x1   :  { %8 = vsyncpa [#allocation7], 0 }
   0x2   :  { %9 = vsyncpa [#allocation5], 0  ;;  %s349_s9 = smov [#allocation3]   ;;  %s350_s11 = smov [#allocation6]  }
   0x3   :  { %s16_s10 = sshll.u32 %s349_s9, 4  ;;  %s25_s12 = sshll.u32 %s350_s11, 4  ;;  %s17_s10 = int_to_ptr.vmem [resolvable:$true] %s16_s10  ;;  %s371_s12 = int_to_ptr.vmem [resolvable:$true] %s25_s12 }
   0x4   :  { %s277_s15 = scalar_lea.hbm %s414_s0, 32 }
   0x5   :  { %p278_p0 = scmp.ne.s32.totalorder %s414_s0, %s277_s15  ;;  %p281_p1 = scmp.lt.u32.totalorder %s277_s15, %s414_s0 }
   0x7   :  { %p283_p2 = pnand %p281_p1, %p278_p0 }
   0x9   :  { %286 = shalt.err (!%p283_p2)
}
   0xa   :  { %s287_s20 = scalar_lea.vmem %s17_s10, 32  ;;  %p292_p4 = scmp.lt.s32.totalorder %s17_s10, %s17_s10 }
   0xb   :  { %p288_p3 = scmp.ne.s32.totalorder %s17_s10, %s287_s20  ;;  %p293_p5 = scmp.lt.s32.totalorder %s287_s20, %s287_s20 }
   0xd   :  { %p294_p6 = por %p293_p5, %p292_p4 }
   0xf   :  { %p295_p7 = pnand %p294_p6, %p288_p3 }
  0x11   :  { %298 = shalt.err (!%p295_p7)
}
  0x12   :  { %19 = dma.hbm_to_vmem [thread:$0]  %s414_s0, 32, %s17_s10, [#allocation4]  }
  0x13   :  { %s299_s25 = scalar_lea.hbm %s415_s1, 2048 }
  0x14   :  { %p300_p8 = scmp.ne.s32.totalorder %s415_s1, %s299_s25  ;;  %p303_p9 = scmp.lt.u32.totalorder %s299_s25, %s415_s1 }
  0x16   :  { %p305_p10 = pnand %p303_p9, %p300_p8 }
  0x18   :  { %308 = shalt.err (!%p305_p10)
}
  0x19   :  { %s309_s30 = scalar_lea.vmem %s371_s12, 2048  ;;  %p314_p12 = scmp.lt.s32.totalorder %s371_s12, %s371_s12 }
  0x1a   :  { %p310_p11 = scmp.ne.s32.totalorder %s371_s12, %s309_s30  ;;  %p315_p13 = scmp.lt.s32.totalorder %s309_s30, %s309_s30 }
  0x1c   :  { %p316_p0 = por %p315_p13, %p314_p12 }
  0x1e   :  { %p317_p1 = pnand %p316_p0, %p310_p11 }
  0x20   :  { %320 = shalt.err (!%p317_p1)
}
  0x21   :  { %s351_s0 = smov 512   ;;  %s352_s3 = smov 32  }
  0x22   :  { %31 = dma.hbm_to_vmem [thread:$0]  %s415_s1, 2048, %s371_s12, [#allocation7], %s351_s0, %s351_s0, %s352_s3  }
  0x23   :  { %343 = dma.done.wait [#allocation4], 32  }
  0x24   :  { %344 = vsyncadd [#allocation4], 4294967264 }
  0x25   :  { %345 = dma.done.wait [#allocation7], 2048  }
  0x26   :  { %346 = vsyncadd [#allocation7], 4294965248  ;;  %v353_v0 = vmov 0.0   ;;  %v46_v1 = vld [vmem:[#allocation6 + $0x8] sm:$0xff]  ;;  %v48_v3 = vld [vmem:[#allocation6 + $0x18] sm:$0xff]  ;;  %vm61_vm0 = vcmask 261120   ;;  %v216_v28 = vlaneseq }
  0x27   :  { %129 = vmatprep.mubr.f32.mxu0 %v353_v0  ;;  %200 = vmatprep.mubr.f32.mxu1 %v353_v0  ;;  %v50_v2 = vld [vmem:[#allocation6 + $0x28] sm:$0xff]  ;;  %v52_v5 = vld [vmem:[#allocation6 + $0x38] sm:$0xff]  ;;  %v45_v6 = vld [vmem:[#allocation6] sm:$0xff]  ;;  %v354_v26 = vmov 1983009808   ;;  %s355_s1 = smov [#allocation8]  }
  0x28   :  { %v254_v4 = vpack.c.bf16 %v50_v2, %v46_v1  ;;  %v49_v7 = vld [vmem:[#allocation6 + $0x20] sm:$0xff]  ;;  %v262_v8 = vpack.c.bf16 %v52_v5, %v48_v3  ;;  %v47_v10 = vld [vmem:[#allocation6 + $0x10] sm:$0xff]  ;;  %v54_v12 = vld [vmem:[#allocation6 + $0x48] sm:$0xff]  ;;  %v214_v27 = vunpack.c.l.s4 %v354_v26  ;;  %v217_v30 = vshrl.u32 %v216_v28, 7  ;;  %s242_s6 = sshll.u32 %s355_s1, 4  ;;  %s243_s6 = int_to_ptr.vmem [resolvable:$true] %s242_s6 }
  0x29   :  { %v256_v9 = vpack.c.bf16 %v49_v7, %v45_v6  ;;  %v51_v11 = vld [vmem:[#allocation6 + $0x30] sm:$0xff]  ;;  %v58_v14 = vld [vmem:[#allocation6 + $0x68] sm:$0xff]  ;;  %v56_v15 = vld [vmem:[#allocation6 + $0x58] sm:$0xff]  ;;  %s321_s7 = scalar_lea.vmem %s243_s6, 128  ;;  %p326_p3 = scmp.lt.s32.totalorder %s243_s6, %s243_s6 }
  0x2a   :  { %255 = vmatprep.subr.bf16.mxu0 %v254_v4  ;;  %v264_v13 = vpack.c.bf16 %v51_v11, %v47_v10  ;;  %v60_v16 = vld [vmem:[#allocation6 + $0x78] sm:$0xff]  ;;  %263 = vmatprep.subr.bf16.mxu1 %v262_v8  ;;  %v258_v17 = vpack.c.bf16 %v58_v14, %v54_v12  ;;  %v53_v19 = vld [vmem:[#allocation6 + $0x40] sm:$0xff]  ;;  %v55_v21 = vld [vmem:[#allocation6 + $0x50] sm:$0xff]  ;;  %v215_v29 = vunpack.c.0.s8 %v214_v27  ;;  %p322_p2 = scmp.ne.s32.totalorder %s243_s6, %s321_s7  ;;  %p327_p4 = scmp.lt.s32.totalorder %s321_s7, %s321_s7 }
  0x2b   :  { %257 = vmatpush1.bf16.msra.mxu0 %v256_v9  ;;  %v266_v18 = vpack.c.bf16 %v60_v16, %v56_v15  ;;  %v57_v20 = vld [vmem:[#allocation6 + $0x60] sm:$0xff]  ;;  %v59_v23 = vld [vmem:[#allocation6 + $0x70] sm:$0xff]  ;;  %v44_v25 = vld [vmem:[#allocation3] sm:$0x3] }
  0x2c   :  { %265 = vmatpush1.bf16.msra.mxu1 %v264_v13  ;;  %v260_v22 = vpack.c.bf16 %v57_v20, %v53_v19  ;;  %259 = vmatprep.subr.bf16.mxu0 %v258_v17  ;;  %v268_v24 = vpack.c.bf16 %v59_v23, %v55_v21  ;;  %v218_v32 = vsub.s32 %v215_v29, %v217_v30  ;;  %p328_p5 = por %p327_p4, %p326_p3 }
  0x2d   :  { %267 = vmatprep.subr.bf16.mxu1 %v266_v18 }
  0x2e   :  { %p329_p6 = pnand %p328_p5, %p322_p2 }
  0x2f   :  { %261 = vmatpush1.bf16.msra.mxu0 %v260_v22 }
  0x30   :  { %269 = vmatpush1.bf16.msra.mxu1 %v268_v24 }
  0x32   :  { %252 = vmatmul.mubr.msk.f32.vlgmr.msra.gmra.mrb[0].mxu0 %vm61_vm0, %v44_v25 }
  0x33   :  { %253 = vmatmul.mubr.msk.f32.vlgmr.msra.gmra.mrb[0].mxu1 %vm61_vm0, %v44_v25 }
 0x105   :  { %v131_v31 = vpop.f32.mrb[0].mxu0 }
 0x106   :  { %v202_v33 = vpop.f32.mrb[0].mxu1  ;;  %v133_v34 = vpop.f32.mrb[1].mxu0 }
 0x107   :  { %v211_v35 = vcombine.low %v131_v31, %v133_v34  ;;  %v204_v36 = vpop.f32.mrb[1].mxu1 }
 0x108   :  { %v212_v37 = vcombine.low %v202_v33, %v204_v36 }
 0x109   :  { %v219_v38 = vrot.slane %v211_v35, %v218_v32 }
 0x10a   :  { %v226_v39 = vrot.slane %v212_v37, %v218_v32 }
 0x10c   :  { %v227_v40 = vcombine.low %v219_v38, %v226_v39 }
 0x10e   :  { %235 = vst [vmem:[#allocation8] sm:$0xff] %v227_v40 }
 0x10f   :  { %332 = shalt.err (!%p329_p6)
}
 0x110   :  { %s333_s10 = scalar_lea.hbm %s416_s2, 128 }
 0x111   :  { %p334_p7 = scmp.ne.s32.totalorder %s416_s2, %s333_s10  ;;  %p337_p8 = scmp.lt.u32.totalorder %s333_s10, %s416_s2 }
 0x113   :  { %p339_p9 = pnand %p337_p8, %p334_p7 }
 0x115   :  { %342 = shalt.err (!%p339_p9)
}
 0x116   :  { %245 = dma.vmem_to_hbm [thread:$0]  %s243_s6, 128, %s416_s2, [#allocation5]  }
 0x117   :  { %347 = dma.done.wait [#allocation5], 128  }
 0x118   :  { %348 = vsyncadd [#allocation5], 4294967168 }
 0x119   :  { %249 = vsyncpa [#allocation4], 1 }
 0x11a   :  { %250 = vsyncpa [#allocation7], 1 }
 0x11b   :  { %251 = vsyncpa [#allocation5], 1 }

// kernel: depth_transformer_forward.47
= control target key start
LH: loop header
LB: loop body
LE: loop exit
PB: predicated region body
PF: predicated region fallthrough
CT: control target
= control target key end

     0   :  { %7 = vsyncpa [#allocation4], 0  ;;  %s326_s0 = inlined_call_operand.hbm [shape: f32[2,33], index: 0, kind: input, shape index: {}]   ;;  %s327_s1 = inlined_call_operand.hbm [shape: f32[33,256], index: 1, kind: input, shape index: {}]   ;;  %s328_s2 = inlined_call_operand.hbm [shape: f32[2,256], index: 2, kind: output, shape index: {}]  }
   0x1   :  { %8 = vsyncpa [#allocation7], 0 }
   0x2   :  { %9 = vsyncpa [#allocation5], 0  ;;  %s261_s9 = smov [#allocation3]   ;;  %s262_s11 = smov [#allocation6]  }
   0x3   :  { %s16_s10 = sshll.u32 %s261_s9, 4  ;;  %s25_s12 = sshll.u32 %s262_s11, 4  ;;  %s17_s10 = int_to_ptr.vmem [resolvable:$true] %s16_s10  ;;  %s283_s12 = int_to_ptr.vmem [resolvable:$true] %s25_s12 }
   0x4   :  { %s189_s15 = scalar_lea.hbm %s326_s0, 32 }
   0x5   :  { %p190_p0 = scmp.ne.s32.totalorder %s326_s0, %s189_s15  ;;  %p193_p1 = scmp.lt.u32.totalorder %s189_s15, %s326_s0 }
   0x7   :  { %p195_p2 = pnand %p193_p1, %p190_p0 }
   0x9   :  { %198 = shalt.err (!%p195_p2)
}
   0xa   :  { %s199_s20 = scalar_lea.vmem %s17_s10, 32  ;;  %p204_p4 = scmp.lt.s32.totalorder %s17_s10, %s17_s10 }
   0xb   :  { %p200_p3 = scmp.ne.s32.totalorder %s17_s10, %s199_s20  ;;  %p205_p5 = scmp.lt.s32.totalorder %s199_s20, %s199_s20 }
   0xd   :  { %p206_p6 = por %p205_p5, %p204_p4 }
   0xf   :  { %p207_p7 = pnand %p206_p6, %p200_p3 }
  0x11   :  { %210 = shalt.err (!%p207_p7)
}
  0x12   :  { %19 = dma.hbm_to_vmem [thread:$0]  %s326_s0, 32, %s17_s10, [#allocation4]  }
  0x13   :  { %s211_s25 = scalar_lea.hbm %s327_s1, 1280 }
  0x14   :  { %p212_p8 = scmp.ne.s32.totalorder %s327_s1, %s211_s25  ;;  %p215_p9 = scmp.lt.u32.totalorder %s211_s25, %s327_s1 }
  0x16   :  { %p217_p10 = pnand %p215_p9, %p212_p8 }
  0x18   :  { %220 = shalt.err (!%p217_p10)
}
  0x19   :  { %s221_s30 = scalar_lea.vmem %s283_s12, 1280  ;;  %p226_p12 = scmp.lt.s32.totalorder %s283_s12, %s283_s12 }
  0x1a   :  { %p222_p11 = scmp.ne.s32.totalorder %s283_s12, %s221_s30  ;;  %p227_p13 = scmp.lt.s32.totalorder %s221_s30, %s221_s30 }
  0x1c   :  { %p228_p0 = por %p227_p13, %p226_p12 }
  0x1e   :  { %p229_p1 = pnand %p228_p0, %p222_p11 }
  0x20   :  { %232 = shalt.err (!%p229_p1)
}
  0x21   :  { %s263_s0 = smov 256   ;;  %s264_s3 = smov 16  }
  0x22   :  { %31 = dma.hbm_to_vmem [thread:$0]  %s327_s1, 1280, %s283_s12, [#allocation7], %s263_s0, %s263_s0, %s264_s3  }
  0x23   :  { %255 = dma.done.wait [#allocation4], 32  }
  0x24   :  { %256 = vsyncadd [#allocation4], 4294967264 }
  0x25   :  { %257 = dma.done.wait [#allocation7], 1280  }
  0x26   :  { %258 = vsyncadd [#allocation7], 4294966016  ;;  %v265_v0 = vmov 0.0   ;;  %v46_v1 = vld [vmem:[#allocation6 + $0x8] sm:$0xff]  ;;  %v48_v2 = vld [vmem:[#allocation6 + $0x18] sm:$0xff]  ;;  %vm59_vm0 = vcmask 1040384   ;;  %v143_v18 = vlaneseq }
  0x27   :  { %42 = vst [vmem:[#allocation2] sm:$0xf] %v265_v0  ;;  %130 = vmatprep.mubr.f32.mxu0 %v265_v0  ;;  %v45_v3 = vld [vmem:[#allocation6] sm:$0xff]  ;;  %v174_v4 = vpack.c.bf16 %v48_v2, %v46_v1  ;;  %v47_v5 = vld [vmem:[#allocation6 + $0x10] sm:$0xff]  ;;  %v50_v6 = vld [vmem:[#allocation6 + $0x28] sm:$0xff]  ;;  %vm55_vm1 = vcmask 269312  }
  0x28   :  { %v52_v7 = vld [vmem:[#allocation6 + $0x38] sm:$0xff]  ;;  %v176_v8 = vpack.c.bf16 %v47_v5, %v45_v3  ;;  %v49_v10 = vld [vmem:[#allocation6 + $0x20] sm:$0xff]  ;;  %v51_v11 = vld [vmem:[#allocation6 + $0x30] sm:$0xff]  ;;  %v266_v16 = vmov 1983009808   ;;  %v144_v20 = vshrl.u32 %v143_v18, 7 }
  0x29   :  { %v178_v9 = vpack.c.bf16 %v52_v7, %v50_v6  ;;  %175 = vmatprep.subr.bf16.mxu0 %v174_v4  ;;  %v180_v12 = vpack.c.bf16 %v51_v11, %v49_v10  ;;  %v54_v13 = vld [vmem:[#allocation6 + $0x48] sm:$0x1]  ;;  %v53_v14 = vld [vmem:[#allocation6 + $0x40] sm:$0x1]  ;;  %v44_v15 = vld [vmem:[#allocation3] sm:$0x3]  ;;  %v141_v17 = vunpack.c.l.s4 %v266_v16 }
  0x2a   :  { %177 = vmatpush1.bf16.msra.mxu0 %v176_v8  ;;  %s267_s1 = smov [#allocation8]  }
  0x2b   :  { %179 = vmatprep.subr.bf16.mxu0 %v178_v9  ;;  %v142_v19 = vunpack.c.0.s8 %v141_v17  ;;  %s161_s6 = sshll.u32 %s267_s1, 4  ;;  %s162_s6 = int_to_ptr.vmem [resolvable:$true] %s161_s6 }
  0x2c   :  { %s233_s7 = scalar_lea.vmem %s162_s6, 64  ;;  %p238_p3 = scmp.lt.s32.totalorder %s162_s6, %s162_s6 }
  0x2d   :  { %v145_v22 = vsub.s32 %v142_v19, %v144_v20  ;;  %p234_p2 = scmp.ne.s32.totalorder %s162_s6, %s233_s7  ;;  %p239_p4 = scmp.lt.s32.totalorder %s233_s7, %s233_s7 }
  0x2e   :  { %181 = vmatpush1.bf16.msra.mxu0 %v180_v12  ;;  %v43_v25 = vld [vmem:[#allocation2] sm:$0xf] }
  0x2f   :  { %171 = vmatprep.subr.msk.mxu0 %vm59_vm0, %v54_v13  ;;  %p240_p5 = por %p239_p4, %p238_p3 }
  0x31   :  { %p241_p6 = pnand %p240_p5, %p234_p2 }
  0x32   :  { %172 = vmatpush1.msk.msra.mxu0 %vm59_vm0, %v53_v14 }
  0x33   :  { %173 = vmatmul.mubr.msk.f32.vlgmr.msra.gmra.mrb[0].mxu0 %vm55_vm1, %v44_v15 }
 0x106   :  { %v132_v21 = vpop.f32.mrb[0].mxu0 }
 0x107   :  { %v134_v23 = vpop.f32.mrb[1].mxu0 }
 0x108   :  { %v139_v24 = vcombine.low %v132_v21, %v134_v23 }
 0x10a   :  { %v146_v26 = vrot.slane %v139_v24, %v145_v22 }
 0x10c   :  { %v148_v27 = vadd.f32 %v146_v26, %v43_v25 }
 0x10e   :  { %149 = vst [vmem:[#allocation2] sm:$0xf] %v148_v27 }
 0x115   :  { %v153_v28 = vld [vmem:[#allocation2] sm:$0xf] }
 0x116   :  { %154 = vst [vmem:[#allocation8] sm:$0xf] %v153_v28 }
 0x117   :  { %244 = shalt.err (!%p241_p6)
}
 0x118   :  { %s245_s10 = scalar_lea.hbm %s328_s2, 64 }
 0x119   :  { %p246_p7 = scmp.ne.s32.totalorder %s328_s2, %s245_s10  ;;  %p249_p8 = scmp.lt.u32.totalorder %s245_s10, %s328_s2 }
 0x11b   :  { %p251_p9 = pnand %p249_p8, %p246_p7 }
 0x11d   :  { %254 = shalt.err (!%p251_p9)
}
 0x11e   :  { %164 = dma.vmem_to_hbm [thread:$0]  %s162_s6, 64, %s328_s2, [#allocation5]  }
 0x11f   :  { %259 = dma.done.wait [#allocation5], 64  }
 0x120   :  { %260 = vsyncadd [#allocation5], 4294967232 }
 0x121   :  { %168 = vsyncpa [#allocation4], 1 }
 0x122   :  { %169 = vsyncpa [#allocation7], 1 }
 0x123   :  { %170 = vsyncpa [#allocation5], 1 }

</bundles_post_ra>
